<compile_context>
chip_gen: v7x
topology: tpu7x:2x2x1
jax: 0.10.0
libtpu: 0.0.40
codegen_flags: <defaults>
</compile_context>

<pallas_src>
import functools
import math

import jax
import jax.numpy as jnp
from jax import lax
from jax.experimental import pallas as pl
from jax.experimental.pallas import tpu as pltpu


# ----------------------------------------------------------------------------
# Shared math helpers (used in-kernel and in the pure-JAX reference)
# ----------------------------------------------------------------------------
def _layernorm(x, gamma, beta, eps=1e-5):
    mu = jnp.mean(x, axis=-1, keepdims=True)
    var = jnp.mean(jnp.square(x - mu), axis=-1, keepdims=True)
    return (x - mu) * lax.rsqrt(var + eps) * gamma + beta


def _mm(a, b):
    # bf16 operands on the MXU, f32 accumulation.
    return jnp.dot(a.astype(jnp.bfloat16), b, preferred_element_type=jnp.float32)


def sinusoidal_pos_emb(n, dim):
    half = dim // 2
    emb = math.log(10000.0) / (half - 1)
    freqs = jnp.exp(jnp.arange(half, dtype=jnp.float32) * -emb)
    args = jnp.arange(n, dtype=jnp.float32)[:, None] * freqs[None, :]
    return jnp.concatenate([jnp.sin(args), jnp.cos(args)], axis=-1)      # (n, dim)


# ----------------------------------------------------------------------------
# Fused kernel: embed (layer 0) -> encoder layer l -> out proj (last layer)
# ----------------------------------------------------------------------------
def fused_kernel(traj_ref, pos_ref, w_obs_ref, emb_vecs_ref,
                 w_attn_ref, w1_ref, b1_ref, w2_ref, vecs_ref,
                 w_out_ref, b_out_ref,
                 out_ref,
                 x_sc, attn_sc,
                 *, nhead, seq_valid):
    layer = pl.program_id(1)
    bb, s_pad, d_model = x_sc.shape
    t_len = traj_ref.shape[1]
    o_dim = traj_ref.shape[2]
    dh = d_model // nhead

    # ---- layer 0: build embeddings into the resident VMEM activations ------
    @pl.when(layer == 0)
    def _embed():
        ev = emb_vecs_ref[...]                                  # (4, D): b,g,beta,attr
        t2 = traj_ref[...].reshape(bb * t_len, o_dim)
        h = _mm(t2, w_obs_ref[...]) + ev[0:1]
        h = _layernorm(h, ev[1:2], ev[2:3])
        h = h.reshape(bb, t_len, d_model) + pos_ref[...][None]
        x_sc[...] = jnp.zeros_like(x_sc)                        # zero the pad rows
        x_sc[:, 0:t_len, :] = h
        x_sc[:, t_len:t_len + 1, :] = jnp.broadcast_to(ev[3:4][None],
                                                       (bb, 1, d_model))

    # ---- one post-LN transformer encoder layer ------------------------------
    x3 = x_sc[...]                                              # (bb, S, D) f32
    x2 = x3.reshape(bb * s_pad, d_model)
    xb = x2.astype(jnp.bfloat16)
    vec = vecs_ref[...]                                         # (9, D) f32

    # Q/K/V with separate weights; 1/sqrt(dh) already folded into Wq/bq.
    q = (_mm(xb, w_attn_ref[0]) + vec[0:1]).reshape(bb, s_pad, d_model)
    k = (_mm(xb, w_attn_ref[1]) + vec[1:2]).reshape(bb, s_pad, d_model)
    v = (_mm(xb, w_attn_ref[2]) + vec[2:3]).reshape(bb, s_pad, d_model)

    # mask out padded key positions (>= seq_valid)
    key_ok = lax.broadcasted_iota(jnp.int32, (bb, s_pad, s_pad), 2) < seq_valid

    for h_i in range(nhead):                                    # static loop, batched over bb
        sl = slice(h_i * dh, (h_i + 1) * dh)
        qh = q[:, :, sl].astype(jnp.bfloat16)
        kh = k[:, :, sl].astype(jnp.bfloat16)
        vh = v[:, :, sl].astype(jnp.bfloat16)
        s = jnp.einsum("bqd,bkd->bqk", qh, kh,
                       preferred_element_type=jnp.float32)      # (bb, S, S)
        s = jnp.where(key_ok, s, -1e30)
        s = s - jnp.max(s, axis=-1, keepdims=True)
        p = jnp.exp(s)
        p = p * pl.reciprocal(jnp.sum(p, axis=-1, keepdims=True), approx=True)
        attn_sc[:, :, sl] = jnp.einsum("bqk,bkd->bqd", p.astype(jnp.bfloat16), vh,
                                       preferred_element_type=jnp.float32)

    a2 = attn_sc[...].reshape(bb * s_pad, d_model)
    a2 = _mm(a2, w_attn_ref[3]) + vec[3:4]                      # out-proj + bias
    x2 = _layernorm(x2 + a2, vec[5:6], vec[6:7])                # norm1

    ff = jnp.maximum(_mm(x2, w1_ref[...]) + b1_ref[...], 0.0)   # ReLU FFN
    y2 = _mm(ff, w2_ref[...]) + vec[4:5]
    x2 = _layernorm(x2 + y2, vec[7:8], vec[8:9])                # norm2

    x_sc[...] = x2.reshape(bb, s_pad, d_model)

    # ---- last layer: project the final (attr) token -------------------------
    @pl.when(layer == pl.num_programs(1) - 1)
    def _project():
        x_last = x2.reshape(bb, s_pad, d_model)[:, seq_valid - 1, :]  # (bb, D)
        out_ref[...] = (_mm(x_last, w_out_ref[...]) + b_out_ref[...]
                        ).astype(out_ref.dtype)


# ----------------------------------------------------------------------------
# Parameter packing: stack per-layer weights, fold the attention scale,
# cast matmul operands to bf16 (halves DMA / VMEM for weights).
# ----------------------------------------------------------------------------
def pack_params(params, nhead):
    D = params["w_obs"].shape[1]
    scale = 1.0 / math.sqrt(D // nhead)
    bf = lambda a: a.astype(jnp.bfloat16)
    layers = params["layers"]
    w_attn = jnp.stack([jnp.stack([lp["wq"] * scale, lp["wk"], lp["wv"], lp["wo"]])
                        for lp in layers])                                    # (L,4,D,D)
    vecs = jnp.stack([jnp.stack([lp["bq"] * scale, lp["bk"], lp["bv"], lp["bo"],
                                 lp["b2"], lp["g1"], lp["be1"], lp["g2"], lp["be2"]])
                      for lp in layers])                                      # (L,9,D)
    w1 = jnp.stack([lp["w1"] for lp in layers])                               # (L,D,F)
    b1 = jnp.stack([lp["b1"][None] for lp in layers])                         # (L,1,F)
    w2 = jnp.stack([lp["w2"] for lp in layers])                               # (L,F,D)
    emb_vecs = jnp.stack([params["b_obs"], params["g_obs"],
                          params["be_obs"], params["attr_emb"]])              # (4,D)
    return dict(w_obs=bf(params["w_obs"]), emb_vecs=emb_vecs,
                w_attn=bf(w_attn), w1=bf(w1), b1=b1, w2=bf(w2), vecs=vecs,
                w_out=bf(params["w_out"]), b_out=params["b_out"][None])


# ----------------------------------------------------------------------------
# Forward wrapper: one fused pallas_call
# ----------------------------------------------------------------------------
def forward(traj, params, d_model, nhead, *, batch_block=None):
    B, T, o_dim = traj.shape
    D = d_model
    L = len(params["layers"])
    F = params["layers"][0]["w1"].shape[1]
    A = params["w_out"].shape[1]
    bb = B if batch_block is None else batch_block     # whole batch per block (tiny B);
    assert B % bb == 0                                  # shrink bb for large B / v7x 2-TC.
    s_pad = pl.cdiv(T + 1, 8) * 8                       # pad seq (incl. attr token) to x8

    pos = sinusoidal_pos_emb(T, D)                      # (T, D) f32
    pk = pack_params(params, nhead)

    kern = functools.partial(fused_kernel, nhead=nhead, seq_valid=T + 1)
    const2 = lambda shape: pl.BlockSpec(shape, lambda i, l: (0, 0))

    return pl.pallas_call(
        kern,
        out_shape=jax.ShapeDtypeStruct((B, A), jnp.float32),
        grid_spec=pltpu.PrefetchScalarGridSpec(
            num_scalar_prefetch=0,
            grid=(B // bb, L),
            in_specs=[
                pl.BlockSpec((bb, T, o_dim), lambda i, l: (i, 0, 0)),      # traj
                const2((T, D)),                                            # pos
                const2((o_dim, D)),                                        # w_obs (bf16)
                const2((4, D)),                                            # b/g/beta/attr
                pl.BlockSpec((None, 4, D, D), lambda i, l: (l, 0, 0, 0)),  # Wq,Wk,Wv,Wo
                pl.BlockSpec((None, D, F), lambda i, l: (l, 0, 0)),        # W1
                pl.BlockSpec((None, 1, F), lambda i, l: (l, 0, 0)),        # b1
                pl.BlockSpec((None, F, D), lambda i, l: (l, 0, 0)),        # W2
                pl.BlockSpec((None, 9, D), lambda i, l: (l, 0, 0)),        # layer vecs
                const2((D, A)),                                            # w_out
                const2((1, A)),                                            # b_out
            ],
            out_specs=pl.BlockSpec((bb, A), lambda i, l: (i, 0)),
            scratch_shapes=[
                pltpu.VMEM((bb, s_pad, D), jnp.float32),   # resident activations
                pltpu.VMEM((bb, s_pad, D), jnp.float32),   # attention head outputs
            ],
        ),
        compiler_params=pltpu.CompilerParams(
            dimension_semantics=("parallel", "arbitrary")),
    )(traj, pos, pk["w_obs"], pk["emb_vecs"], pk["w_attn"], pk["w1"], pk["b1"],
      pk["w2"], pk["vecs"], pk["w_out"], pk["b_out"])


# ----------------------------------------------------------------------------
# Parameter init (randomized biases/LN params so the check is meaningful)
# ----------------------------------------------------------------------------
def init_params(key, o_dim, attr_dim, d_model, nhead, num_layers):
    D, F = d_model, d_model * 4
    ks = iter(jax.random.split(key, 7 + 16 * num_layers))
    nrm = lambda shape, s=0.02: jax.random.normal(next(ks), shape, jnp.float32) * s
    p = {
        "w_obs": nrm((o_dim, D)), "b_obs": nrm((D,)),
        "g_obs": 1.0 + nrm((D,), 0.1), "be_obs": nrm((D,), 0.1),
        "attr_emb": nrm((D,), 0.1),   # PyTorch inits this to zeros; random here to test the path
        "w_out": nrm((D, attr_dim)), "b_out": nrm((attr_dim,)),
        "layers": [],
    }
    for _ in range(num_layers):
        p["layers"].append({
            "wq": nrm((D, D)), "wk": nrm((D, D)), "wv": nrm((D, D)), "wo": nrm((D, D)),
            "bq": nrm((D,)), "bk": nrm((D,)), "bv": nrm((D,)), "bo": nrm((D,)),
            "g1": 1.0 + nrm((D,), 0.1), "be1": nrm((D,), 0.1),
            "w1": nrm((D, F)), "b1": nrm((F,)),
            "w2": nrm((F, D)), "b2": nrm((D,)),
            "g2": 1.0 + nrm((D,), 0.1), "be2": nrm((D,), 0.1),
        })
    return p


# ----------------------------------------------------------------------------
# Pure-JAX reference (same module math; matmul-operand dtype selectable)
# ----------------------------------------------------------------------------
def reference_forward(traj, params, d_model, nhead, mm_dtype=jnp.float32):
    B, T, _ = traj.shape
    D, dh = d_model, d_model // nhead
    S = T + 1
    hi = jax.lax.Precision.HIGHEST

    def mm(a, b):
        return jnp.dot(a.astype(mm_dtype), b.astype(mm_dtype),
                       preferred_element_type=jnp.float32, precision=hi)

    pos = sinusoidal_pos_emb(T, D)[None]
    h = mm(traj.reshape(B * T, -1), params["w_obs"]) + params["b_obs"]
    h = _layernorm(h, params["g_obs"], params["be_obs"]).reshape(B, T, D) + pos
    attr = jnp.broadcast_to(params["attr_emb"][None, None], (B, 1, D))
    x = jnp.concatenate([h, attr], axis=1)                                   # (B,S,D)
    for lp in params["layers"]:
        x2 = x.reshape(B * S, D)
        q = (mm(x2, lp["wq"]) + lp["bq"]).reshape(B, S, nhead, dh)
        k = (mm(x2, lp["wk"]) + lp["bk"]).reshape(B, S, nhead, dh)
        v = (mm(x2, lp["wv"]) + lp["bv"]).reshape(B, S, nhead, dh)
        s = jnp.einsum("bqhd,bkhd->bhqk", q.astype(mm_dtype), k.astype(mm_dtype),
                       preferred_element_type=jnp.float32, precision=hi) / math.sqrt(dh)
        p_att = jax.nn.softmax(s, axis=-1)
        a = jnp.einsum("bhqk,bkhd->bqhd", p_att.astype(mm_dtype), v.astype(mm_dtype),
                       preferred_element_type=jnp.float32, precision=hi)
        a = mm(a.reshape(B * S, D), lp["wo"]) + lp["bo"]
        x2 = _layernorm(x2 + a, lp["g1"], lp["be1"])
        f = jnp.maximum(mm(x2, lp["w1"]) + lp["b1"], 0.0)
        y = mm(f, lp["w2"]) + lp["b2"]
        x2 = _layernorm(x2 + y, lp["g2"], lp["be2"])
        x = x2.reshape(B, S, D)
    return mm(x[:, -1], params["w_out"]) + params["b_out"]


# ----------------------------------------------------------------------------
if __name__ == "__main__":
    B, T, o_dim = 2, 8, 16
    d_model, nhead, num_layers, attr_dim = 32, 4, 2, 4

    key = jax.random.PRNGKey(0)
    k_traj, k_params = jax.random.split(key)
    traj = jax.random.normal(k_traj, (B, T, o_dim), jnp.float32)
    params = init_params(k_params, o_dim, attr_dim, d_model, nhead, num_layers)

    out = jax.block_until_ready(forward(traj, params, d_model, nhead))

    # tight check: reference doing the same bf16-operand / f32-accumulate math
    ref_bf16 = jax.block_until_ready(
        reference_forward(traj, params, d_model, nhead, mm_dtype=jnp.bfloat16))
    # loose check: true f32 module semantics
    ref_f32 = jax.block_until_ready(
        reference_forward(traj, params, d_model, nhead, mm_dtype=jnp.float32))

    assert out.shape == (B, attr_dim)
    assert jnp.allclose(out, ref_bf16, rtol=5e-3, atol=5e-3), "mismatch vs bf16 reference"
    assert jnp.allclose(out, ref_f32, rtol=3e-2, atol=3e-2), "mismatch vs f32 reference"

    # TODO(synk): dropout inside TransformerEncoderLayer is eval-mode identity here.
    print("KERNEL_OK")
</pallas_src>

<mosaic_0001>
module attributes {stable_mosaic.version = 11 : i64} {
  func.func @fused_kernel(%arg0: i32, %arg1: i32, %arg2: memref<2x8x16xf32, #tpu.memory_space<vmem>>, %arg3: memref<8x32xf32, #tpu.memory_space<vmem>>, %arg4: memref<16x32xbf16, #tpu.memory_space<vmem>>, %arg5: memref<4x32xf32, #tpu.memory_space<vmem>>, %arg6: memref<1x4x32x32xbf16, #tpu.memory_space<vmem>>, %arg7: memref<1x32x128xbf16, #tpu.memory_space<vmem>>, %arg8: memref<1x1x128xf32, #tpu.memory_space<vmem>>, %arg9: memref<1x128x32xbf16, #tpu.memory_space<vmem>>, %arg10: memref<1x9x32xf32, #tpu.memory_space<vmem>>, %arg11: memref<32x4xbf16, #tpu.memory_space<vmem>>, %arg12: memref<1x4xf32, #tpu.memory_space<vmem>>, %arg13: memref<2x4xf32, #tpu.memory_space<vmem>>, %arg14: memref<2x16x32xf32, #tpu.memory_space<vmem>>, %arg15: memref<2x16x32xf32, #tpu.memory_space<vmem>>) attributes {dimension_semantics = [#tpu.dimension_semantics<parallel>, #tpu.dimension_semantics<arbitrary>], iteration_bounds = array<i64: 1, 2>, scalar_prefetch = 0 : i64, scratch_operands = 2 : i64, tpu.core_type = #tpu.core_type<tc>, window_params = [{transform_indices = @transform_0, window_bounds = array<i64: 2, 8, 16>}, {pipeline_mode = #tpu.pipeline_mode<synchronous>, transform_indices = @transform_1, window_bounds = array<i64: 8, 32>}, {pipeline_mode = #tpu.pipeline_mode<synchronous>, transform_indices = @transform_2, window_bounds = array<i64: 16, 32>}, {pipeline_mode = #tpu.pipeline_mode<synchronous>, transform_indices = @transform_3, window_bounds = array<i64: 4, 32>}, {transform_indices = @transform_4, window_bounds = array<i64: 1, 4, 32, 32>}, {transform_indices = @transform_5, window_bounds = array<i64: 1, 32, 128>}, {transform_indices = @transform_6, window_bounds = array<i64: 1, 1, 128>}, {transform_indices = @transform_7, window_bounds = array<i64: 1, 128, 32>}, {transform_indices = @transform_8, window_bounds = array<i64: 1, 9, 32>}, {pipeline_mode = #tpu.pipeline_mode<synchronous>, transform_indices = @transform_9, window_bounds = array<i64: 32, 4>}, {pipeline_mode = #tpu.pipeline_mode<synchronous>, transform_indices = @transform_10, window_bounds = array<i64: 1, 4>}, {transform_indices = @transform_11, window_bounds = array<i64: 2, 4>}]} {
    %c0_i32 = arith.constant 0 : i32
    %0 = arith.cmpi eq, %arg1, %c0_i32 : i32
    %1 = arith.extui %0 : i1 to i32
    %c0_i32_0 = arith.constant 0 : i32
    %2 = arith.cmpi ne, %1, %c0_i32_0 : i32
    scf.if %2 {
      %c0_80 = arith.constant 0 : index
      %c0_81 = arith.constant 0 : index
      %201 = vector.load %arg5[%c0_80, %c0_81] : memref<4x32xf32, #tpu.memory_space<vmem>>, vector<4x32xf32>
      %c0_82 = arith.constant 0 : index
      %c0_83 = arith.constant 0 : index
      %c0_84 = arith.constant 0 : index
      %202 = vector.load %arg2[%c0_82, %c0_83, %c0_84] : memref<2x8x16xf32, #tpu.memory_space<vmem>>, vector<2x8x16xf32>
      %203 = vector.shape_cast %202 : vector<2x8x16xf32> to vector<16x16xf32>
      %c0_85 = arith.constant 0 : index
      %c0_86 = arith.constant 0 : index
      %204 = vector.load %arg4[%c0_85, %c0_86] : memref<16x32xbf16, #tpu.memory_space<vmem>>, vector<16x32xbf16>
      %205 = arith.truncf %203 : vector<16x16xf32> to vector<16x16xbf16>
      %cst_87 = arith.constant dense<0.000000e+00> : vector<16x32xf32>
      %206 = tpu.matmul %205, %204, %cst_87 {dimension_numbers = #tpu.dot_dimension_numbers<[1], [0], [0], [1], [0, 0, 1, 1], [], []>} : vector<16x16xbf16>, vector<16x32xbf16>, vector<16x32xf32> -> vector<16x32xf32>
      %207 = vector.extract_strided_slice %201 {offsets = [0, 0], sizes = [1, 32], strides = [1, 1]} : vector<4x32xf32> to vector<1x32xf32>
      %208 = vector.broadcast %207 : vector<1x32xf32> to vector<16x32xf32>
      %209 = arith.addf %206, %208 : vector<16x32xf32>
      %210 = vector.extract_strided_slice %201 {offsets = [1, 0], sizes = [1, 32], strides = [1, 1]} : vector<4x32xf32> to vector<1x32xf32>
      %211 = vector.extract_strided_slice %201 {offsets = [2, 0], sizes = [1, 32], strides = [1, 1]} : vector<4x32xf32> to vector<1x32xf32>
      %cst_88 = arith.constant dense<0.000000e+00> : vector<16xf32>
      %212 = vector.multi_reduction <add>, %209, %cst_88 [1] : vector<16x32xf32> to vector<16xf32>
      %213 = vector.shape_cast %212 : vector<16xf32> to vector<16x1xf32>
      %cst_89 = arith.constant 3.200000e+01 : f32
      %214 = vector.broadcast %cst_89 : f32 to vector<16x1xf32>
      %215 = arith.divf %213, %214 : vector<16x1xf32>
      %216 = vector.broadcast %215 : vector<16x1xf32> to vector<16x32xf32>
      %217 = arith.subf %209, %216 : vector<16x32xf32>
      %218 = arith.mulf %217, %217 : vector<16x32xf32>
      %cst_90 = arith.constant dense<0.000000e+00> : vector<16xf32>
      %219 = vector.multi_reduction <add>, %218, %cst_90 [1] : vector<16x32xf32> to vector<16xf32>
      %220 = vector.shape_cast %219 : vector<16xf32> to vector<16x1xf32>
      %cst_91 = arith.constant 3.200000e+01 : f32
      %221 = vector.broadcast %cst_91 : f32 to vector<16x1xf32>
      %222 = arith.divf %220, %221 : vector<16x1xf32>
      %223 = vector.broadcast %215 : vector<16x1xf32> to vector<16x32xf32>
      %224 = arith.subf %209, %223 : vector<16x32xf32>
      %cst_92 = arith.constant 9.99999974E-6 : f32
      %225 = vector.broadcast %cst_92 : f32 to vector<16x1xf32>
      %226 = arith.addf %222, %225 : vector<16x1xf32>
      %227 = math.rsqrt %226 : vector<16x1xf32>
      %228 = vector.broadcast %227 : vector<16x1xf32> to vector<16x32xf32>
      %229 = arith.mulf %224, %228 : vector<16x32xf32>
      %230 = vector.broadcast %210 : vector<1x32xf32> to vector<16x32xf32>
      %231 = arith.mulf %229, %230 : vector<16x32xf32>
      %232 = vector.broadcast %211 : vector<1x32xf32> to vector<16x32xf32>
      %233 = arith.addf %231, %232 : vector<16x32xf32>
      %234 = vector.shape_cast %233 : vector<16x32xf32> to vector<2x8x32xf32>
      %c0_93 = arith.constant 0 : index
      %c0_94 = arith.constant 0 : index
      %235 = vector.load %arg3[%c0_93, %c0_94] : memref<8x32xf32, #tpu.memory_space<vmem>>, vector<8x32xf32>
      %236 = vector.shape_cast %235 : vector<8x32xf32> to vector<1x8x32xf32>
      %237 = vector.broadcast %236 : vector<1x8x32xf32> to vector<2x8x32xf32>
      %238 = arith.addf %234, %237 : vector<2x8x32xf32>
      %cst_95 = arith.constant 0.000000e+00 : f32
      %239 = vector.broadcast %cst_95 : f32 to vector<2x16x32xf32>
      %c0_96 = arith.constant 0 : index
      %c0_97 = arith.constant 0 : index
      %c0_98 = arith.constant 0 : index
      %240 = vector.load %arg14[%c0_96, %c0_97, %c0_98] : memref<2x16x32xf32, #tpu.memory_space<vmem>>, vector<2x16x32xf32>
      tpu.vector_store %arg14[%c0_96, %c0_97, %c0_98], %239 {strides = array<i32>} : memref<2x16x32xf32, #tpu.memory_space<vmem>>, vector<2x16x32xf32>,
      %c0_99 = arith.constant 0 : index
      %c0_100 = arith.constant 0 : index
      %c0_101 = arith.constant 0 : index
      %241 = vector.load %arg14[%c0_99, %c0_100, %c0_101] : memref<2x16x32xf32, #tpu.memory_space<vmem>>, vector<2x8x32xf32>
      tpu.vector_store %arg14[%c0_99, %c0_100, %c0_101], %238 {strides = array<i32>} : memref<2x16x32xf32, #tpu.memory_space<vmem>>, vector<2x8x32xf32>,
      %242 = vector.extract_strided_slice %201 {offsets = [3, 0], sizes = [1, 32], strides = [1, 1]} : vector<4x32xf32> to vector<1x32xf32>
      %243 = vector.shape_cast %242 : vector<1x32xf32> to vector<1x1x32xf32>
      %244 = vector.shape_cast %243 : vector<1x1x32xf32> to vector<1x1x32xf32>
      %245 = vector.broadcast %244 : vector<1x1x32xf32> to vector<2x1x32xf32>
      %c0_102 = arith.constant 0 : index
      %c8_103 = arith.constant 8 : index
      %c0_104 = arith.constant 0 : index
      %246 = vector.load %arg14[%c0_102, %c8_103, %c0_104] : memref<2x16x32xf32, #tpu.memory_space<vmem>>, vector<2x1x32xf32>
      tpu.vector_store %arg14[%c0_102, %c8_103, %c0_104], %245 {strides = array<i32>} : memref<2x16x32xf32, #tpu.memory_space<vmem>>, vector<2x1x32xf32>,
    } else {
    }
    %c0 = arith.constant 0 : index
    %c0_1 = arith.constant 0 : index
    %c0_2 = arith.constant 0 : index
    %3 = vector.load %arg14[%c0, %c0_1, %c0_2] : memref<2x16x32xf32, #tpu.memory_space<vmem>>, vector<2x16x32xf32>
    %4 = vector.shape_cast %3 : vector<2x16x32xf32> to vector<32x32xf32>
    %5 = arith.truncf %4 : vector<32x32xf32> to vector<32x32xbf16>
    %c0_3 = arith.constant 0 : index
    %c0_4 = arith.constant 0 : index
    %c0_5 = arith.constant 0 : index
    %6 = vector.load %arg10[%c0_3, %c0_4, %c0_5] : memref<1x9x32xf32, #tpu.memory_space<vmem>>, vector<1x9x32xf32>
    %7 = vector.shape_cast %6 : vector<1x9x32xf32> to vector<9x32xf32>
    %c0_6 = arith.constant 0 : index
    %c0_7 = arith.constant 0 : index
    %c0_8 = arith.constant 0 : index
    %c0_9 = arith.constant 0 : index
    %8 = vector.load %arg6[%c0_6, %c0_7, %c0_8, %c0_9] : memref<1x4x32x32xbf16, #tpu.memory_space<vmem>>, vector<1x1x32x32xbf16>
    %9 = vector.shape_cast %8 : vector<1x1x32x32xbf16> to vector<32x32xbf16>
    %cst = arith.constant dense<0.000000e+00> : vector<32x32xf32>
    %10 = tpu.matmul %5, %9, %cst {dimension_numbers = #tpu.dot_dimension_numbers<[1], [0], [0], [1], [0, 0, 1, 1], [], []>} : vector<32x32xbf16>, vector<32x32xbf16>, vector<32x32xf32> -> vector<32x32xf32>
    %11 = vector.extract_strided_slice %7 {offsets = [0, 0], sizes = [1, 32], strides = [1, 1]} : vector<9x32xf32> to vector<1x32xf32>
    %12 = vector.broadcast %11 : vector<1x32xf32> to vector<32x32xf32>
    %13 = arith.addf %10, %12 : vector<32x32xf32>
    %14 = vector.shape_cast %13 : vector<32x32xf32> to vector<2x16x32xf32>
    %c0_10 = arith.constant 0 : index
    %c1 = arith.constant 1 : index
    %c0_11 = arith.constant 0 : index
    %c0_12 = arith.constant 0 : index
    %15 = vector.load %arg6[%c0_10, %c1, %c0_11, %c0_12] : memref<1x4x32x32xbf16, #tpu.memory_space<vmem>>, vector<1x1x32x32xbf16>
    %16 = vector.shape_cast %15 : vector<1x1x32x32xbf16> to vector<32x32xbf16>
    %cst_13 = arith.constant dense<0.000000e+00> : vector<32x32xf32>
    %17 = tpu.matmul %5, %16, %cst_13 {dimension_numbers = #tpu.dot_dimension_numbers<[1], [0], [0], [1], [0, 0, 1, 1], [], []>} : vector<32x32xbf16>, vector<32x32xbf16>, vector<32x32xf32> -> vector<32x32xf32>
    %18 = vector.extract_strided_slice %7 {offsets = [1, 0], sizes = [1, 32], strides = [1, 1]} : vector<9x32xf32> to vector<1x32xf32>
    %19 = vector.broadcast %18 : vector<1x32xf32> to vector<32x32xf32>
    %20 = arith.addf %17, %19 : vector<32x32xf32>
    %21 = vector.shape_cast %20 : vector<32x32xf32> to vector<2x16x32xf32>
    %c0_14 = arith.constant 0 : index
    %c2 = arith.constant 2 : index
    %c0_15 = arith.constant 0 : index
    %c0_16 = arith.constant 0 : index
    %22 = vector.load %arg6[%c0_14, %c2, %c0_15, %c0_16] : memref<1x4x32x32xbf16, #tpu.memory_space<vmem>>, vector<1x1x32x32xbf16>
    %23 = vector.shape_cast %22 : vector<1x1x32x32xbf16> to vector<32x32xbf16>
    %cst_17 = arith.constant dense<0.000000e+00> : vector<32x32xf32>
    %24 = tpu.matmul %5, %23, %cst_17 {dimension_numbers = #tpu.dot_dimension_numbers<[1], [0], [0], [1], [0, 0, 1, 1], [], []>} : vector<32x32xbf16>, vector<32x32xbf16>, vector<32x32xf32> -> vector<32x32xf32>
    %25 = vector.extract_strided_slice %7 {offsets = [2, 0], sizes = [1, 32], strides = [1, 1]} : vector<9x32xf32> to vector<1x32xf32>
    %26 = vector.broadcast %25 : vector<1x32xf32> to vector<32x32xf32>
    %27 = arith.addf %24, %26 : vector<32x32xf32>
    %28 = vector.shape_cast %27 : vector<32x32xf32> to vector<2x16x32xf32>
    %29 = tpu.iota {dimensions = array<i32: 2>} : vector<2x16x16xi32>
    %c9_i32 = arith.constant 9 : i32
    %30 = vector.broadcast %c9_i32 : i32 to vector<2x16x16xi32>
    %31 = arith.cmpi slt, %29, %30 : vector<2x16x16xi32>
    %32 = vector.extract_strided_slice %14 {offsets = [0, 0, 0], sizes = [2, 16, 8], strides = [1, 1, 1]} : vector<2x16x32xf32> to vector<2x16x8xf32>
    %33 = arith.truncf %32 : vector<2x16x8xf32> to vector<2x16x8xbf16>
    %34 = vector.extract_strided_slice %21 {offsets = [0, 0, 0], sizes = [2, 16, 8], strides = [1, 1, 1]} : vector<2x16x32xf32> to vector<2x16x8xf32>
    %35 = arith.truncf %34 : vector<2x16x8xf32> to vector<2x16x8xbf16>
    %36 = vector.extract_strided_slice %28 {offsets = [0, 0, 0], sizes = [2, 16, 8], strides = [1, 1, 1]} : vector<2x16x32xf32> to vector<2x16x8xf32>
    %37 = arith.truncf %36 : vector<2x16x8xf32> to vector<2x16x8xbf16>
    "tpu.trace_start"() <{level = 10 : i32, message = "bqd,bkd->bqk"}> : () -> ()
    %cst_18 = arith.constant dense<0.000000e+00> : vector<2x16x16xf32>
    %38 = tpu.matmul %33, %35, %cst_18 {dimension_numbers = #tpu.dot_dimension_numbers<[2], [2], [1], [1], [0, 0, 0, 1, 1, 1], [0], [0]>} : vector<2x16x8xbf16>, vector<2x16x8xbf16>, vector<2x16x16xf32> -> vector<2x16x16xf32>
    %cst_19 = arith.constant -1.000000e+30 : f32
    "tpu.trace_stop"() : () -> ()
    %39 = vector.broadcast %cst_19 : f32 to vector<2x16x16xf32>
    %40 = arith.select %31, %38, %39 : vector<2x16x16xi1>, vector<2x16x16xf32>
    %cst_20 = arith.constant dense<0xFF800000> : vector<2x16xf32>
    %41 = vector.multi_reduction <maximumf>, %40, %cst_20 [2] : vector<2x16x16xf32> to vector<2x16xf32>
    %42 = vector.shape_cast %41 : vector<2x16xf32> to vector<2x16x1xf32>
    %43 = vector.broadcast %42 : vector<2x16x1xf32> to vector<2x16x16xf32>
    %44 = arith.subf %40, %43 : vector<2x16x16xf32>
    %45 = math.exp %44 : vector<2x16x16xf32>
    %cst_21 = arith.constant dense<0.000000e+00> : vector<2x16xf32>
    %46 = vector.multi_reduction <add>, %45, %cst_21 [2] : vector<2x16x16xf32> to vector<2x16xf32>
    %47 = vector.shape_cast %46 : vector<2x16xf32> to vector<2x16x1xf32>
    %48 = tpu.reciprocal %47 {approx = true} : vector<2x16x1xf32> -> vector<2x16x1xf32>
    %49 = vector.broadcast %48 : vector<2x16x1xf32> to vector<2x16x16xf32>
    %50 = arith.mulf %45, %49 : vector<2x16x16xf32>
    %51 = arith.truncf %50 : vector<2x16x16xf32> to vector<2x16x16xbf16>
    "tpu.trace_start"() <{level = 10 : i32, message = "bqk,bkd->bqd"}> : () -> ()
    %cst_22 = arith.constant dense<0.000000e+00> : vector<2x16x8xf32>
    %52 = tpu.matmul %51, %37, %cst_22 {dimension_numbers = #tpu.dot_dimension_numbers<[2], [1], [1], [2], [0, 0, 0, 1, 1, 2], [0], [0]>} : vector<2x16x16xbf16>, vector<2x16x8xbf16>, vector<2x16x8xf32> -> vector<2x16x8xf32>
    "tpu.trace_stop"() : () -> ()
    %c0_23 = arith.constant 0 : index
    %c0_24 = arith.constant 0 : index
    %c0_25 = arith.constant 0 : index
    %53 = vector.load %arg15[%c0_23, %c0_24, %c0_25] : memref<2x16x32xf32, #tpu.memory_space<vmem>>, vector<2x16x8xf32>
    tpu.vector_store %arg15[%c0_23, %c0_24, %c0_25], %52 {strides = array<i32>} : memref<2x16x32xf32, #tpu.memory_space<vmem>>, vector<2x16x8xf32>,
    %54 = vector.extract_strided_slice %14 {offsets = [0, 0, 8], sizes = [2, 16, 8], strides = [1, 1, 1]} : vector<2x16x32xf32> to vector<2x16x8xf32>
    %55 = arith.truncf %54 : vector<2x16x8xf32> to vector<2x16x8xbf16>
    %56 = vector.extract_strided_slice %21 {offsets = [0, 0, 8], sizes = [2, 16, 8], strides = [1, 1, 1]} : vector<2x16x32xf32> to vector<2x16x8xf32>
    %57 = arith.truncf %56 : vector<2x16x8xf32> to vector<2x16x8xbf16>
    %58 = vector.extract_strided_slice %28 {offsets = [0, 0, 8], sizes = [2, 16, 8], strides = [1, 1, 1]} : vector<2x16x32xf32> to vector<2x16x8xf32>
    %59 = arith.truncf %58 : vector<2x16x8xf32> to vector<2x16x8xbf16>
    "tpu.trace_start"() <{level = 10 : i32, message = "bqd,bkd->bqk"}> : () -> ()
    %cst_26 = arith.constant dense<0.000000e+00> : vector<2x16x16xf32>
    %60 = tpu.matmul %55, %57, %cst_26 {dimension_numbers = #tpu.dot_dimension_numbers<[2], [2], [1], [1], [0, 0, 0, 1, 1, 1], [0], [0]>} : vector<2x16x8xbf16>, vector<2x16x8xbf16>, vector<2x16x16xf32> -> vector<2x16x16xf32>
    %cst_27 = arith.constant -1.000000e+30 : f32
    "tpu.trace_stop"() : () -> ()
    %61 = vector.broadcast %cst_27 : f32 to vector<2x16x16xf32>
    %62 = arith.select %31, %60, %61 : vector<2x16x16xi1>, vector<2x16x16xf32>
    %cst_28 = arith.constant dense<0xFF800000> : vector<2x16xf32>
    %63 = vector.multi_reduction <maximumf>, %62, %cst_28 [2] : vector<2x16x16xf32> to vector<2x16xf32>
    %64 = vector.shape_cast %63 : vector<2x16xf32> to vector<2x16x1xf32>
    %65 = vector.broadcast %64 : vector<2x16x1xf32> to vector<2x16x16xf32>
    %66 = arith.subf %62, %65 : vector<2x16x16xf32>
    %67 = math.exp %66 : vector<2x16x16xf32>
    %cst_29 = arith.constant dense<0.000000e+00> : vector<2x16xf32>
    %68 = vector.multi_reduction <add>, %67, %cst_29 [2] : vector<2x16x16xf32> to vector<2x16xf32>
    %69 = vector.shape_cast %68 : vector<2x16xf32> to vector<2x16x1xf32>
    %70 = tpu.reciprocal %69 {approx = true} : vector<2x16x1xf32> -> vector<2x16x1xf32>
    %71 = vector.broadcast %70 : vector<2x16x1xf32> to vector<2x16x16xf32>
    %72 = arith.mulf %67, %71 : vector<2x16x16xf32>
    %73 = arith.truncf %72 : vector<2x16x16xf32> to vector<2x16x16xbf16>
    "tpu.trace_start"() <{level = 10 : i32, message = "bqk,bkd->bqd"}> : () -> ()
    %cst_30 = arith.constant dense<0.000000e+00> : vector<2x16x8xf32>
    %74 = tpu.matmul %73, %59, %cst_30 {dimension_numbers = #tpu.dot_dimension_numbers<[2], [1], [1], [2], [0, 0, 0, 1, 1, 2], [0], [0]>} : vector<2x16x16xbf16>, vector<2x16x8xbf16>, vector<2x16x8xf32> -> vector<2x16x8xf32>
    "tpu.trace_stop"() : () -> ()
    %c0_31 = arith.constant 0 : index
    %c0_32 = arith.constant 0 : index
    %c8 = arith.constant 8 : index
    %75 = vector.load %arg15[%c0_31, %c0_32, %c8] : memref<2x16x32xf32, #tpu.memory_space<vmem>>, vector<2x16x8xf32>
    tpu.vector_store %arg15[%c0_31, %c0_32, %c8], %74 {strides = array<i32>} : memref<2x16x32xf32, #tpu.memory_space<vmem>>, vector<2x16x8xf32>,
    %76 = vector.extract_strided_slice %14 {offsets = [0, 0, 16], sizes = [2, 16, 8], strides = [1, 1, 1]} : vector<2x16x32xf32> to vector<2x16x8xf32>
    %77 = arith.truncf %76 : vector<2x16x8xf32> to vector<2x16x8xbf16>
    %78 = vector.extract_strided_slice %21 {offsets = [0, 0, 16], sizes = [2, 16, 8], strides = [1, 1, 1]} : vector<2x16x32xf32> to vector<2x16x8xf32>
    %79 = arith.truncf %78 : vector<2x16x8xf32> to vector<2x16x8xbf16>
    %80 = vector.extract_strided_slice %28 {offsets = [0, 0, 16], sizes = [2, 16, 8], strides = [1, 1, 1]} : vector<2x16x32xf32> to vector<2x16x8xf32>
    %81 = arith.truncf %80 : vector<2x16x8xf32> to vector<2x16x8xbf16>
    "tpu.trace_start"() <{level = 10 : i32, message = "bqd,bkd->bqk"}> : () -> ()
    %cst_33 = arith.constant dense<0.000000e+00> : vector<2x16x16xf32>
    %82 = tpu.matmul %77, %79, %cst_33 {dimension_numbers = #tpu.dot_dimension_numbers<[2], [2], [1], [1], [0, 0, 0, 1, 1, 1], [0], [0]>} : vector<2x16x8xbf16>, vector<2x16x8xbf16>, vector<2x16x16xf32> -> vector<2x16x16xf32>
    %cst_34 = arith.constant -1.000000e+30 : f32
    "tpu.trace_stop"() : () -> ()
    %83 = vector.broadcast %cst_34 : f32 to vector<2x16x16xf32>
    %84 = arith.select %31, %82, %83 : vector<2x16x16xi1>, vector<2x16x16xf32>
    %cst_35 = arith.constant dense<0xFF800000> : vector<2x16xf32>
    %85 = vector.multi_reduction <maximumf>, %84, %cst_35 [2] : vector<2x16x16xf32> to vector<2x16xf32>
    %86 = vector.shape_cast %85 : vector<2x16xf32> to vector<2x16x1xf32>
    %87 = vector.broadcast %86 : vector<2x16x1xf32> to vector<2x16x16xf32>
    %88 = arith.subf %84, %87 : vector<2x16x16xf32>
    %89 = math.exp %88 : vector<2x16x16xf32>
    %cst_36 = arith.constant dense<0.000000e+00> : vector<2x16xf32>
    %90 = vector.multi_reduction <add>, %89, %cst_36 [2] : vector<2x16x16xf32> to vector<2x16xf32>
    %91 = vector.shape_cast %90 : vector<2x16xf32> to vector<2x16x1xf32>
    %92 = tpu.reciprocal %91 {approx = true} : vector<2x16x1xf32> -> vector<2x16x1xf32>
    %93 = vector.broadcast %92 : vector<2x16x1xf32> to vector<2x16x16xf32>
    %94 = arith.mulf %89, %93 : vector<2x16x16xf32>
    %95 = arith.truncf %94 : vector<2x16x16xf32> to vector<2x16x16xbf16>
    "tpu.trace_start"() <{level = 10 : i32, message = "bqk,bkd->bqd"}> : () -> ()
    %cst_37 = arith.constant dense<0.000000e+00> : vector<2x16x8xf32>
    %96 = tpu.matmul %95, %81, %cst_37 {dimension_numbers = #tpu.dot_dimension_numbers<[2], [1], [1], [2], [0, 0, 0, 1, 1, 2], [0], [0]>} : vector<2x16x16xbf16>, vector<2x16x8xbf16>, vector<2x16x8xf32> -> vector<2x16x8xf32>
    "tpu.trace_stop"() : () -> ()
    %c0_38 = arith.constant 0 : index
    %c0_39 = arith.constant 0 : index
    %c16 = arith.constant 16 : index
    %97 = vector.load %arg15[%c0_38, %c0_39, %c16] : memref<2x16x32xf32, #tpu.memory_space<vmem>>, vector<2x16x8xf32>
    tpu.vector_store %arg15[%c0_38, %c0_39, %c16], %96 {strides = array<i32>} : memref<2x16x32xf32, #tpu.memory_space<vmem>>, vector<2x16x8xf32>,
    %98 = vector.extract_strided_slice %14 {offsets = [0, 0, 24], sizes = [2, 16, 8], strides = [1, 1, 1]} : vector<2x16x32xf32> to vector<2x16x8xf32>
    %99 = arith.truncf %98 : vector<2x16x8xf32> to vector<2x16x8xbf16>
    %100 = vector.extract_strided_slice %21 {offsets = [0, 0, 24], sizes = [2, 16, 8], strides = [1, 1, 1]} : vector<2x16x32xf32> to vector<2x16x8xf32>
    %101 = arith.truncf %100 : vector<2x16x8xf32> to vector<2x16x8xbf16>
    %102 = vector.extract_strided_slice %28 {offsets = [0, 0, 24], sizes = [2, 16, 8], strides = [1, 1, 1]} : vector<2x16x32xf32> to vector<2x16x8xf32>
    %103 = arith.truncf %102 : vector<2x16x8xf32> to vector<2x16x8xbf16>
    "tpu.trace_start"() <{level = 10 : i32, message = "bqd,bkd->bqk"}> : () -> ()
    %cst_40 = arith.constant dense<0.000000e+00> : vector<2x16x16xf32>
    %104 = tpu.matmul %99, %101, %cst_40 {dimension_numbers = #tpu.dot_dimension_numbers<[2], [2], [1], [1], [0, 0, 0, 1, 1, 1], [0], [0]>} : vector<2x16x8xbf16>, vector<2x16x8xbf16>, vector<2x16x16xf32> -> vector<2x16x16xf32>
    %cst_41 = arith.constant -1.000000e+30 : f32
    "tpu.trace_stop"() : () -> ()
    %105 = vector.broadcast %cst_41 : f32 to vector<2x16x16xf32>
    %106 = arith.select %31, %104, %105 : vector<2x16x16xi1>, vector<2x16x16xf32>
    %cst_42 = arith.constant dense<0xFF800000> : vector<2x16xf32>
    %107 = vector.multi_reduction <maximumf>, %106, %cst_42 [2] : vector<2x16x16xf32> to vector<2x16xf32>
    %108 = vector.shape_cast %107 : vector<2x16xf32> to vector<2x16x1xf32>
    %109 = vector.broadcast %108 : vector<2x16x1xf32> to vector<2x16x16xf32>
    %110 = arith.subf %106, %109 : vector<2x16x16xf32>
    %111 = math.exp %110 : vector<2x16x16xf32>
    %cst_43 = arith.constant dense<0.000000e+00> : vector<2x16xf32>
    %112 = vector.multi_reduction <add>, %111, %cst_43 [2] : vector<2x16x16xf32> to vector<2x16xf32>
    %113 = vector.shape_cast %112 : vector<2x16xf32> to vector<2x16x1xf32>
    %114 = tpu.reciprocal %113 {approx = true} : vector<2x16x1xf32> -> vector<2x16x1xf32>
    %115 = vector.broadcast %114 : vector<2x16x1xf32> to vector<2x16x16xf32>
    %116 = arith.mulf %111, %115 : vector<2x16x16xf32>
    %117 = arith.truncf %116 : vector<2x16x16xf32> to vector<2x16x16xbf16>
    "tpu.trace_start"() <{level = 10 : i32, message = "bqk,bkd->bqd"}> : () -> ()
    %cst_44 = arith.constant dense<0.000000e+00> : vector<2x16x8xf32>
    %118 = tpu.matmul %117, %103, %cst_44 {dimension_numbers = #tpu.dot_dimension_numbers<[2], [1], [1], [2], [0, 0, 0, 1, 1, 2], [0], [0]>} : vector<2x16x16xbf16>, vector<2x16x8xbf16>, vector<2x16x8xf32> -> vector<2x16x8xf32>
    "tpu.trace_stop"() : () -> ()
    %c0_45 = arith.constant 0 : index
    %c0_46 = arith.constant 0 : index
    %c24 = arith.constant 24 : index
    %119 = vector.load %arg15[%c0_45, %c0_46, %c24] : memref<2x16x32xf32, #tpu.memory_space<vmem>>, vector<2x16x8xf32>
    tpu.vector_store %arg15[%c0_45, %c0_46, %c24], %118 {strides = array<i32>} : memref<2x16x32xf32, #tpu.memory_space<vmem>>, vector<2x16x8xf32>,
    %c0_47 = arith.constant 0 : index
    %c0_48 = arith.constant 0 : index
    %c0_49 = arith.constant 0 : index
    %120 = vector.load %arg15[%c0_47, %c0_48, %c0_49] : memref<2x16x32xf32, #tpu.memory_space<vmem>>, vector<2x16x32xf32>
    %121 = vector.shape_cast %120 : vector<2x16x32xf32> to vector<32x32xf32>
    %c0_50 = arith.constant 0 : index
    %c3 = arith.constant 3 : index
    %c0_51 = arith.constant 0 : index
    %c0_52 = arith.constant 0 : index
    %122 = vector.load %arg6[%c0_50, %c3, %c0_51, %c0_52] : memref<1x4x32x32xbf16, #tpu.memory_space<vmem>>, vector<1x1x32x32xbf16>
    %123 = vector.shape_cast %122 : vector<1x1x32x32xbf16> to vector<32x32xbf16>
    %124 = arith.truncf %121 : vector<32x32xf32> to vector<32x32xbf16>
    %cst_53 = arith.constant dense<0.000000e+00> : vector<32x32xf32>
    %125 = tpu.matmul %124, %123, %cst_53 {dimension_numbers = #tpu.dot_dimension_numbers<[1], [0], [0], [1], [0, 0, 1, 1], [], []>} : vector<32x32xbf16>, vector<32x32xbf16>, vector<32x32xf32> -> vector<32x32xf32>
    %126 = vector.extract_strided_slice %7 {offsets = [3, 0], sizes = [1, 32], strides = [1, 1]} : vector<9x32xf32> to vector<1x32xf32>
    %127 = vector.broadcast %126 : vector<1x32xf32> to vector<32x32xf32>
    %128 = arith.addf %125, %127 : vector<32x32xf32>
    %129 = arith.addf %4, %128 : vector<32x32xf32>
    %130 = vector.extract_strided_slice %7 {offsets = [5, 0], sizes = [1, 32], strides = [1, 1]} : vector<9x32xf32> to vector<1x32xf32>
    %131 = vector.extract_strided_slice %7 {offsets = [6, 0], sizes = [1, 32], strides = [1, 1]} : vector<9x32xf32> to vector<1x32xf32>
    %cst_54 = arith.constant dense<0.000000e+00> : vector<32xf32>
    %132 = vector.multi_reduction <add>, %129, %cst_54 [1] : vector<32x32xf32> to vector<32xf32>
    %133 = vector.shape_cast %132 : vector<32xf32> to vector<32x1xf32>
    %cst_55 = arith.constant 3.200000e+01 : f32
    %134 = vector.broadcast %cst_55 : f32 to vector<32x1xf32>
    %135 = arith.divf %133, %134 : vector<32x1xf32>
    %136 = vector.broadcast %135 : vector<32x1xf32> to vector<32x32xf32>
    %137 = arith.subf %129, %136 : vector<32x32xf32>
    %138 = arith.mulf %137, %137 : vector<32x32xf32>
    %cst_56 = arith.constant dense<0.000000e+00> : vector<32xf32>
    %139 = vector.multi_reduction <add>, %138, %cst_56 [1] : vector<32x32xf32> to vector<32xf32>
    %140 = vector.shape_cast %139 : vector<32xf32> to vector<32x1xf32>
    %cst_57 = arith.constant 3.200000e+01 : f32
    %141 = vector.broadcast %cst_57 : f32 to vector<32x1xf32>
    %142 = arith.divf %140, %141 : vector<32x1xf32>
    %143 = vector.broadcast %135 : vector<32x1xf32> to vector<32x32xf32>
    %144 = arith.subf %129, %143 : vector<32x32xf32>
    %cst_58 = arith.constant 9.99999974E-6 : f32
    %145 = vector.broadcast %cst_58 : f32 to vector<32x1xf32>
    %146 = arith.addf %142, %145 : vector<32x1xf32>
    %147 = math.rsqrt %146 : vector<32x1xf32>
    %148 = vector.broadcast %147 : vector<32x1xf32> to vector<32x32xf32>
    %149 = arith.mulf %144, %148 : vector<32x32xf32>
    %150 = vector.broadcast %130 : vector<1x32xf32> to vector<32x32xf32>
    %151 = arith.mulf %149, %150 : vector<32x32xf32>
    %152 = vector.broadcast %131 : vector<1x32xf32> to vector<32x32xf32>
    %153 = arith.addf %151, %152 : vector<32x32xf32>
    %c0_59 = arith.constant 0 : index
    %c0_60 = arith.constant 0 : index
    %c0_61 = arith.constant 0 : index
    %154 = vector.load %arg7[%c0_59, %c0_60, %c0_61] : memref<1x32x128xbf16, #tpu.memory_space<vmem>>, vector<1x32x128xbf16>
    %155 = vector.shape_cast %154 : vector<1x32x128xbf16> to vector<32x128xbf16>
    %156 = arith.truncf %153 : vector<32x32xf32> to vector<32x32xbf16>
    %cst_62 = arith.constant dense<0.000000e+00> : vector<32x128xf32>
    %157 = tpu.matmul %156, %155, %cst_62 {dimension_numbers = #tpu.dot_dimension_numbers<[1], [0], [0], [1], [0, 0, 1, 1], [], []>} : vector<32x32xbf16>, vector<32x128xbf16>, vector<32x128xf32> -> vector<32x128xf32>
    %c0_63 = arith.constant 0 : index
    %c0_64 = arith.constant 0 : index
    %c0_65 = arith.constant 0 : index
    %158 = vector.load %arg8[%c0_63, %c0_64, %c0_65] : memref<1x1x128xf32, #tpu.memory_space<vmem>>, vector<1x1x128xf32>
    %159 = vector.shape_cast %158 : vector<1x1x128xf32> to vector<1x128xf32>
    %160 = vector.broadcast %159 : vector<1x128xf32> to vector<32x128xf32>
    %161 = arith.addf %157, %160 : vector<32x128xf32>
    %cst_66 = arith.constant 0.000000e+00 : f32
    %162 = vector.broadcast %cst_66 : f32 to vector<32x128xf32>
    %163 = arith.maximumf %161, %162 : vector<32x128xf32>
    %c0_67 = arith.constant 0 : index
    %c0_68 = arith.constant 0 : index
    %c0_69 = arith.constant 0 : index
    %164 = vector.load %arg9[%c0_67, %c0_68, %c0_69] : memref<1x128x32xbf16, #tpu.memory_space<vmem>>, vector<1x128x32xbf16>
    %165 = vector.shape_cast %164 : vector<1x128x32xbf16> to vector<128x32xbf16>
    %166 = arith.truncf %163 : vector<32x128xf32> to vector<32x128xbf16>
    %cst_70 = arith.constant dense<0.000000e+00> : vector<32x32xf32>
    %167 = tpu.matmul %166, %165, %cst_70 {dimension_numbers = #tpu.dot_dimension_numbers<[1], [0], [0], [1], [0, 0, 1, 1], [], []>} : vector<32x128xbf16>, vector<128x32xbf16>, vector<32x32xf32> -> vector<32x32xf32>
    %168 = vector.extract_strided_slice %7 {offsets = [4, 0], sizes = [1, 32], strides = [1, 1]} : vector<9x32xf32> to vector<1x32xf32>
    %169 = vector.broadcast %168 : vector<1x32xf32> to vector<32x32xf32>
    %170 = arith.addf %167, %169 : vector<32x32xf32>
    %171 = arith.addf %153, %170 : vector<32x32xf32>
    %172 = vector.extract_strided_slice %7 {offsets = [7, 0], sizes = [1, 32], strides = [1, 1]} : vector<9x32xf32> to vector<1x32xf32>
    %173 = vector.extract_strided_slice %7 {offsets = [8, 0], sizes = [1, 32], strides = [1, 1]} : vector<9x32xf32> to vector<1x32xf32>
    %cst_71 = arith.constant dense<0.000000e+00> : vector<32xf32>
    %174 = vector.multi_reduction <add>, %171, %cst_71 [1] : vector<32x32xf32> to vector<32xf32>
    %175 = vector.shape_cast %174 : vector<32xf32> to vector<32x1xf32>
    %cst_72 = arith.constant 3.200000e+01 : f32
    %176 = vector.broadcast %cst_72 : f32 to vector<32x1xf32>
    %177 = arith.divf %175, %176 : vector<32x1xf32>
    %178 = vector.broadcast %177 : vector<32x1xf32> to vector<32x32xf32>
    %179 = arith.subf %171, %178 : vector<32x32xf32>
    %180 = arith.mulf %179, %179 : vector<32x32xf32>
    %cst_73 = arith.constant dense<0.000000e+00> : vector<32xf32>
    %181 = vector.multi_reduction <add>, %180, %cst_73 [1] : vector<32x32xf32> to vector<32xf32>
    %182 = vector.shape_cast %181 : vector<32xf32> to vector<32x1xf32>
    %cst_74 = arith.constant 3.200000e+01 : f32
    %183 = vector.broadcast %cst_74 : f32 to vector<32x1xf32>
    %184 = arith.divf %182, %183 : vector<32x1xf32>
    %185 = vector.broadcast %177 : vector<32x1xf32> to vector<32x32xf32>
    %186 = arith.subf %171, %185 : vector<32x32xf32>
    %cst_75 = arith.constant 9.99999974E-6 : f32
    %187 = vector.broadcast %cst_75 : f32 to vector<32x1xf32>
    %188 = arith.addf %184, %187 : vector<32x1xf32>
    %189 = math.rsqrt %188 : vector<32x1xf32>
    %190 = vector.broadcast %189 : vector<32x1xf32> to vector<32x32xf32>
    %191 = arith.mulf %186, %190 : vector<32x32xf32>
    %192 = vector.broadcast %172 : vector<1x32xf32> to vector<32x32xf32>
    %193 = arith.mulf %191, %192 : vector<32x32xf32>
    %194 = vector.broadcast %173 : vector<1x32xf32> to vector<32x32xf32>
    %195 = arith.addf %193, %194 : vector<32x32xf32>
    %196 = vector.shape_cast %195 : vector<32x32xf32> to vector<2x16x32xf32>
    %c0_76 = arith.constant 0 : index
    %c0_77 = arith.constant 0 : index
    %c0_78 = arith.constant 0 : index
    %197 = vector.load %arg14[%c0_76, %c0_77, %c0_78] : memref<2x16x32xf32, #tpu.memory_space<vmem>>, vector<2x16x32xf32>
    tpu.vector_store %arg14[%c0_76, %c0_77, %c0_78], %196 {strides = array<i32>} : memref<2x16x32xf32, #tpu.memory_space<vmem>>, vector<2x16x32xf32>,
    %c1_i32 = arith.constant 1 : i32
    %198 = arith.cmpi eq, %arg1, %c1_i32 : i32
    %199 = arith.extui %198 : i1 to i32
    %c0_i32_79 = arith.constant 0 : i32
    %200 = arith.cmpi ne, %199, %c0_i32_79 : i32
    scf.if %200 {
      %201 = vector.shape_cast %195 : vector<32x32xf32> to vector<2x16x32xf32>
      %202 = vector.extract_strided_slice %201 {offsets = [0, 8, 0], sizes = [2, 1, 32], strides = [1, 1, 1]} : vector<2x16x32xf32> to vector<2x1x32xf32>
      %203 = vector.shape_cast %202 : vector<2x1x32xf32> to vector<2x32xf32>
      %c0_80 = arith.constant 0 : index
      %c0_81 = arith.constant 0 : index
      %204 = vector.load %arg11[%c0_80, %c0_81] : memref<32x4xbf16, #tpu.memory_space<vmem>>, vector<32x4xbf16>
      %205 = arith.truncf %203 : vector<2x32xf32> to vector<2x32xbf16>
      %cst_82 = arith.constant dense<0.000000e+00> : vector<2x4xf32>
      %206 = tpu.matmul %205, %204, %cst_82 {dimension_numbers = #tpu.dot_dimension_numbers<[1], [0], [0], [1], [0, 0, 1, 1], [], []>} : vector<2x32xbf16>, vector<32x4xbf16>, vector<2x4xf32> -> vector<2x4xf32>
      %c0_83 = arith.constant 0 : index
      %c0_84 = arith.constant 0 : index
      %207 = vector.load %arg12[%c0_83, %c0_84] : memref<1x4xf32, #tpu.memory_space<vmem>>, vector<1x4xf32>
      %208 = vector.broadcast %207 : vector<1x4xf32> to vector<2x4xf32>
      %209 = arith.addf %206, %208 : vector<2x4xf32>
      %c0_85 = arith.constant 0 : index
      %c0_86 = arith.constant 0 : index
      %210 = vector.load %arg13[%c0_85, %c0_86] : memref<2x4xf32, #tpu.memory_space<vmem>>, vector<2x4xf32>
      tpu.vector_store %arg13[%c0_85, %c0_86], %209 {strides = array<i32>} : memref<2x4xf32, #tpu.memory_space<vmem>>, vector<2x4xf32>,
    } else {
    }
    return
  }
  func.func @transform_0(%arg0: i32, %arg1: i32) -> (i32, i32, i32) {
    %c0_i32 = arith.constant 0 : i32
    %c0_i32_0 = arith.constant 0 : i32
    %c0_i32_1 = arith.constant 0 : i32
    return %arg0, %c0_i32, %c0_i32_0 : i32, i32, i32
  }
  func.func @transform_1(%arg0: i32, %arg1: i32) -> (i32, i32) {
    %c0_i32 = arith.constant 0 : i32
    %c0_i32_0 = arith.constant 0 : i32
    %c0_i32_1 = arith.constant 0 : i32
    return %c0_i32, %c0_i32_0 : i32, i32
  }
  func.func @transform_2(%arg0: i32, %arg1: i32) -> (i32, i32) {
    %c0_i32 = arith.constant 0 : i32
    %c0_i32_0 = arith.constant 0 : i32
    %c0_i32_1 = arith.constant 0 : i32
    return %c0_i32, %c0_i32_0 : i32, i32
  }
  func.func @transform_3(%arg0: i32, %arg1: i32) -> (i32, i32) {
    %c0_i32 = arith.constant 0 : i32
    %c0_i32_0 = arith.constant 0 : i32
    %c0_i32_1 = arith.constant 0 : i32
    return %c0_i32, %c0_i32_0 : i32, i32
  }
  func.func @transform_4(%arg0: i32, %arg1: i32) -> (i32, i32, i32, i32) {
    %c0_i32 = arith.constant 0 : i32
    %c0_i32_0 = arith.constant 0 : i32
    %c0_i32_1 = arith.constant 0 : i32
    %c0_i32_2 = arith.constant 0 : i32
    return %arg1, %c0_i32, %c0_i32_0, %c0_i32_1 : i32, i32, i32, i32
  }
  func.func @transform_5(%arg0: i32, %arg1: i32) -> (i32, i32, i32) {
    %c0_i32 = arith.constant 0 : i32
    %c0_i32_0 = arith.constant 0 : i32
    %c0_i32_1 = arith.constant 0 : i32
    return %arg1, %c0_i32, %c0_i32_0 : i32, i32, i32
  }
  func.func @transform_6(%arg0: i32, %arg1: i32) -> (i32, i32, i32) {
    %c0_i32 = arith.constant 0 : i32
    %c0_i32_0 = arith.constant 0 : i32
    %c0_i32_1 = arith.constant 0 : i32
    return %arg1, %c0_i32, %c0_i32_0 : i32, i32, i32
  }
  func.func @transform_7(%arg0: i32, %arg1: i32) -> (i32, i32, i32) {
    %c0_i32 = arith.constant 0 : i32
    %c0_i32_0 = arith.constant 0 : i32
    %c0_i32_1 = arith.constant 0 : i32
    return %arg1, %c0_i32, %c0_i32_0 : i32, i32, i32
  }
  func.func @transform_8(%arg0: i32, %arg1: i32) -> (i32, i32, i32) {
    %c0_i32 = arith.constant 0 : i32
    %c0_i32_0 = arith.constant 0 : i32
    %c0_i32_1 = arith.constant 0 : i32
    return %arg1, %c0_i32, %c0_i32_0 : i32, i32, i32
  }
  func.func @transform_9(%arg0: i32, %arg1: i32) -> (i32, i32) {
    %c0_i32 = arith.constant 0 : i32
    %c0_i32_0 = arith.constant 0 : i32
    %c0_i32_1 = arith.constant 0 : i32
    return %c0_i32, %c0_i32_0 : i32, i32
  }
  func.func @transform_10(%arg0: i32, %arg1: i32) -> (i32, i32) {
    %c0_i32 = arith.constant 0 : i32
    %c0_i32_0 = arith.constant 0 : i32
    %c0_i32_1 = arith.constant 0 : i32
    return %c0_i32, %c0_i32_0 : i32, i32
  }
  func.func @transform_11(%arg0: i32, %arg1: i32) -> (i32, i32) {
    %c0_i32 = arith.constant 0 : i32
    %c0_i32_0 = arith.constant 0 : i32
    return %arg0, %c0_i32 : i32, i32
  }
}

</mosaic_0001>

<bundles_post_ra>
// kernel: tpu_custom_call.1
= control target key start
LH: loop header
LB: loop body
LE: loop exit
PB: predicated region body
PF: predicated region fallthrough
CT: control target
= control target key end

     0   :  { %16 = vsyncpa [#allocation5], 0  ;;  %s3121_s17 = smov 0   ;;  %s3123_s18 = smov 0   ;;  %s3567_s0 = inlined_call_operand.vmem [shape: f32[2,8,16], index: 0, kind: input, shape index: {}]   ;;  %s3568_s1 = inlined_call_operand.vmem [shape: f32[8,32], index: 1, kind: input, shape index: {}]   ;;  %s3569_s2 = inlined_call_operand.vmem [shape: bf16[16,32], index: 2, kind: input, shape index: {}]   ;;  %s3570_s3 = inlined_call_operand.vmem [shape: f32[4,32], index: 3, kind: input, shape index: {}]   ;;  %s3571_s4 = inlined_call_operand.vmem [shape: bf16[2,4,32,32], index: 4, kind: input, shape index: {}]   ;;  %s3572_s5 = inlined_call_operand.vmem [shape: bf16[2,32,128], index: 5, kind: input, shape index: {}]   ;;  %s3573_s6 = inlined_call_operand.vmem [shape: f32[2,1,128], index: 6, kind: input, shape index: {}]   ;;  %s3574_s7 = inlined_call_operand.vmem [shape: bf16[2,128,32], index: 7, kind: input, shape index: {}]   ;;  %s3575_s8 = inlined_call_operand.vmem [shape: f32[2,9,32], index: 8, kind: input, shape index: {}]   ;;  %s3576_s9 = inlined_call_operand.vmem [shape: bf16[32,4], index: 9, kind: input, shape index: {}]   ;;  %s3577_s10 = inlined_call_operand.vmem [shape: f32[1,4], index: 10, kind: input, shape index: {}]   ;;  %s3578_s11 = inlined_call_operand.hbm [shape: f32[2,4], index: 11, kind: output, shape index: {}]  }
   0x1   :  { %s3125_s19 = smov 0  }
   0x2 LB: > { %3580 = sst [smem:[#allocation7_spill]] %s3042_s18  ;;  %s31_s21 = sadd.s32 1, %s3042_s18  ;;  %s3046_s19 = sphi %s3125_s19, %s22_s19   ;;  %s3042_s18 = sphi %s3123_s18, %s3585_s18   ;;  %s3038_s17 = sphi %s3121_s17, %s3584_s17  }
   0x3   : > { %p32_p0 = scmp.ge.s32.totalorder %s31_s21, 2  ;;  %p2521_p1 = scmp.ge.s32.totalorder %s3046_s19, 1 }
   0x4   : > { %p399_p2 = scmp.lt.s32.totalorder %s3046_s19, 3 }
   0x5   : > { %s3587_s21 = smov (%p32_p0, %s31_s21), 0 }
   0x6   : > { %3581 = sst [smem:[#allocation8_spill]] %s3587_s21  ;;  %p400_p3 = pnand %p2521_p1, %p399_p2 }
   0x7   : > { %p463_p4 = scmp.lt.s32.totalorder (!%p400_p3), %s3038_s17, 1  ;;  %p2530_p5 = scmp.ne.s32.totalorder (!%p400_p3), %s3038_s17, 0 }
   0x8   : > { %403 = sbr.rel (%p400_p3) target bundleno = 4872 (0x1308), region = 64 }
   0xf   : > { %s3144_s22 = scalar_select %p463_p4, %s3038_s17, 1 }
  0x10   : > { %490 = sbr.rel (%p2530_p5) target bundleno = 555 (0x22b), region = 68  ;;  %vm552_vm0 = vcmask (!%p2530_p5), 261120   ;;  %v3048_v0 = vmov (!%p2530_p5), 0.0   ;;  %v2884_v1 = vld [vmem:[%s3569_s2] sm:$0xff] (!%p2530_p5)   ;;  %v493_v3 = vld [vmem:[%s3567_s0 + $0x8] sm:$0xff] (!%p2530_p5)  ;;  %vm3049_vm1 = vmmov (!%p2530_p5), 0   ;;  %v497_v6 = vlaneseq (!%p2530_p5) }
  0x11   : > { %s2600_s23 = sshll.u32 %s3144_s22, 6  ;;  %s2601_s24 = sshll.u32 %s3144_s22, 4  ;;  %2671 = vmatprep.subr.bf16.mxu0 (!%p2530_p5), %v3048_v0  ;;  %595 = vst.msk [vmem:[#allocation2] sm:$0xff] (!%p2530_p5), %vm552_vm0, %v3048_v0  ;;  %597 = vst.msk [vmem:[#allocation2 + $0x10] sm:$0xff] (!%p2530_p5), %vm552_vm0, %v3048_v0  ;;  %v492_v2 = vld [vmem:[%s3567_s0] sm:$0xff] (!%p2530_p5)  ;;  %2673 = vmatprep.mubr.msk.bf16.mxu0 (!%p2530_p5), %vm3049_vm1, %v3048_v0  ;;  %vm507_vm2 = vcmask (!%p2530_p5), 130048  }
  0x12   : > { %s3151_s27 = scalar_lea.vmem %s3571_s4, %s2600_s23  ;;  %s3156_s30 = scalar_lea.vmem %s3572_s5, %s2601_s24  ;;  %596 = vst.msk [vmem:[#allocation2 + $0x8] sm:$0xff] (!%p2530_p5), %vm552_vm0, %v3048_v0  ;;  %598 = vst.msk [vmem:[#allocation2 + $0x18] sm:$0xff] (!%p2530_p5), %vm552_vm0, %v3048_v0  ;;  %v496_v4 = vpack.c.bf16 (!%p2530_p5), %v493_v3, %v492_v2  ;;  %2672 = vmatpush3.bf16.msra.mxu0 (!%p2530_p5), %v2884_v1  ;;  %v491_v5 = vld [vmem:[%s3570_s3] sm:$0xf] (!%p2530_p5)  ;;  %vm601_vm3 = vcmask (!%p2530_p5), 257027   ;;  %v498_v7 = vshrl.u32 (!%p2530_p5), %v497_v6, 7 }
  0x13   : > { %s475_s14 = scalar_lea.vmem %s3573_s6, %s3144_s22  ;;  %s3165_s20 = scalar_lea.vmem %s3574_s7, %s2600_s23  ;;  %602 = vst.msk [vmem:[#allocation2 + $0x5] sm:$0x8] (!%p2530_p5), %vm601_vm3, %v491_v5  ;;  %603 = vst.msk [vmem:[#allocation2 + $0x15] sm:$0x8] (!%p2530_p5), %vm601_vm3, %v491_v5  ;;  %v592_v42 = vld [vmem:[%s3568_s1] sm:$0xff] (!%p2530_p5) }
  0x14   : > { %s3170_s25 = scalar_lea.vmem %s3575_s8, %s2601_s24  ;;  %v499_v8 = vsub.s32 (!%p2530_p5), 0, %v498_v7  ;;  %v582_v34 = vsub.s32 (!%p2530_p5), 1, %v498_v7  ;;  %v588_v35 = vsub.s32 (!%p2530_p5), 2, %v498_v7 }
  0x15   : > { %2674 = vmatmul.mubr.msk.bf16.vlgmr.msra.gmra.mrb[0].mxu0 (!%p2530_p5), %vm507_vm2, %v496_v4 }
  0x16   : > { %v500_v9 = vrot.slane (!%p2530_p5), %v491_v5, %v499_v8  ;;  %v583_v36 = vrot.slane (!%p2530_p5), %v491_v5, %v582_v34  ;;  %v589_v38 = vrot.slane (!%p2530_p5), %v491_v5, %v588_v35 }
  0xe8   : > { %v545_v10 = vpop.f32.mrb[0].mxu0 }
  0xe9   : > { %v546_v11 = vadd.f32 %v545_v10, %v500_v9  ;;  %v2675_v12 = vpop.f32.mrb[1].mxu0 }
  0xea   : > { %v548_v13 = vpop.f32.mrb[2].mxu0 }
  0xeb   : > { %v549_v14 = vadd.f32 %v548_v13, %v500_v9  ;;  %v2676_v15 = vpop.f32.mrb[3].mxu0  ;;  %v553_v16 = vsel %vm552_vm0, %v546_v11, 0.0 }
  0xec   : > { %554 = vadd.xlane.f32.xlu0 %v553_v16 }
  0xed   : > { %v556_v17 = vsel %vm552_vm0, %v549_v14, 0.0 }
  0xf0   : > { %557 = vadd.xlane.f32.xlu0 %v556_v17 }
 0x179   : > { %v555_v18 = vpop.xlane.xlu0 %554 }
 0x17a   : > { %v560_v19 = vmul.f32 0.03125, %v555_v18 }
 0x17c   : > { %v562_v20 = vsub.f32 %v546_v11, %v560_v19 }
 0x17d   : > { %v558_v21 = vpop.xlane.xlu0 %557 }
 0x17e   : > { %v561_v22 = vmul.f32 0.03125, %v558_v21  ;;  %v564_v23 = vmul.f32 %v562_v20, %v562_v20 }
 0x180   : > { %v563_v24 = vsub.f32 %v549_v14, %v561_v22  ;;  %v566_v25 = vsel %vm552_vm0, %v564_v23, 0.0 }
 0x181   : > { %567 = vadd.xlane.f32.xlu1 %v566_v25 }
 0x182   : > { %v565_v26 = vmul.f32 %v563_v24, %v563_v24 }
 0x184   : > { %v569_v27 = vsel %vm552_vm0, %v565_v26, 0.0 }
 0x185   : > { %570 = vadd.xlane.f32.xlu1 %v569_v27 }
 0x20e   : > { %v568_v28 = vpop.xlane.xlu1 %567 }
 0x20f   : > { %v572_v29 = vmul.f32 0.03125, %v568_v28 }
 0x211   : > { %v574_v30 = vadd.f32 1e-05, %v572_v29 }
 0x212   : > { %v571_v31 = vpop.xlane.xlu1 %570 }
 0x213   : > { %2885 = vrsqrt.f32 %v574_v30  ;;  %v573_v32 = vmul.f32 0.03125, %v571_v31 }
 0x215   : > { %v575_v33 = vadd.f32 1e-05, %v573_v32 }
 0x217   : > { %2887 = vrsqrt.f32 %v575_v33 }
 0x21d   : > { %v2886_v37 = vpop.eup %2885 }
 0x21e   : > { %v578_v39 = vmul.f32 %v2886_v37, %v562_v20 }
 0x220   : > { %v584_v40 = vmul.f32 %v583_v36, %v578_v39 }
 0x221   : > { %v2888_v41 = vpop.eup %2887 }
 0x222   : > { %v590_v43 = vadd.f32 %v589_v38, %v584_v40  ;;  %v579_v44 = vmul.f32 %v2888_v41, %v563_v24 }
 0x224   : > { %v593_v45 = vadd.f32 %v592_v42, %v590_v43  ;;  %v585_v46 = vmul.f32 %v583_v36, %v579_v44 }
 0x226   : > { %599 = vst.msk [vmem:[#allocation2] sm:$0xff] %vm552_vm0, %v593_v45  ;;  %v591_v47 = vadd.f32 %v589_v38, %v585_v46 }
 0x228   : > { %v594_v48 = vadd.f32 %v592_v42, %v591_v47 }
 0x22a   : > { %600 = vst.msk [vmem:[#allocation2 + $0x10] sm:$0xff] %vm552_vm0, %v594_v48 }
 0x22b PF: > { %v2889_v49 = vld [vmem:[%s3151_s27] sm:$0xff]   ;;  %v2890_v50 = vld [vmem:[%s3151_s27 + $0x8] sm:$0xff]   ;;  %vm632_vm4 = vcmask 261120   ;;  %v2891_v56 = vld [vmem:[%s3151_s27 + $0x10] sm:$0xff]   ;;  %v3050_v61 = vmov 0.0   ;;  %vm3051_vm5 = vmmov 0   ;;  %v616_v62 = vlaneseq }
 0x22c   : > { %2677 = vmatprep.subr.bf16.mxu0 %v2889_v49  ;;  %v2892_v58 = vld [vmem:[%s3151_s27 + $0x18] sm:$0xff]   ;;  %v2893_v59 = vld [vmem:[%s3151_s27 + $0x20] sm:$0xff]   ;;  %v2894_v60 = vld [vmem:[%s3151_s27 + $0x28] sm:$0xff]   ;;  %2701 = vmatprep.subr.bf16.mxu1 %v3050_v61  ;;  %vm837_vm6 = vcmask 64512   ;;  %vm936_vm8 = vcmask 130048   ;;  %s3052_s16 = smov 120  }
 0x22d   : > { %v604_v51 = vld [vmem:[#allocation2] sm:$0xff]  ;;  %2678 = vmatpush3.bf16.msra.mxu0 %v2889_v49  ;;  %2703 = vmatprep.mubr.msk.bf16.mxu1 %vm3051_vm5, %v3050_v61  ;;  %v3216_v63 = vshrl.u32 %v616_v62, 7  ;;  %v3257_v39 = vand.u32 127, %v616_v62  ;;  %s3053_s23 = smov 112   ;;  %s3054_s26 = smov 104   ;;  %vm1343_vm9 = vcmask 130112  }
 0x22e   : > { %v605_v52 = vld [vmem:[#allocation2 + $0x8] sm:$0xff]  ;;  %v607_v55 = vld [vmem:[#allocation2 + $0x18] sm:$0xff]  ;;  %2679 = vmatprep.subr.bf16.mxu0 %v2890_v50  ;;  %v3220_v1 = vld [vmem:[%s3170_s25] sm:$0xff]  ;;  %s3055_s18 = smov 8   ;;  %s3056_s21 = smov 16   ;;  %vm1610_vm10 = vcmask 195712  }
 0x22f   : > { %v608_v54 = vpack.c.bf16 %v605_v52, %v604_v51  ;;  %v618_v0 = vsub.s32 0, %v3216_v63  ;;  %v695_v9 = vsub.s32 1, %v3216_v63  ;;  %v765_v27 = vsub.s32 2, %v3216_v63  ;;  %s3057_s24 = smov 24   ;;  %p2591_p6 = scmp.ne.s32.totalorder %s3038_s17, 1 }
 0x230   : > { %vm830_vm7 = vcmp.lt.s32.totalorder %v3257_v39, 9  ;;  %vm1877_vm11 = vcmask 261312   ;;  %vm3059_vm12 = vmmov (!%p2591_p6), 0   ;;  %vm2338_vm13 = vcmask (!%p2591_p6), 1041409  }
 0x231   : > { %v606_v53 = vld [vmem:[#allocation2 + $0x10] sm:$0xff]  ;;  %2681 = vmatprep.mubr.msk.bf16.mxu0 %vm632_vm4, %v608_v54  ;;  %2680 = vmatpush3.bf16.msra.mxu0 %v2890_v50  ;;  %v619_v2 = vrot.slane %v3220_v1, %v618_v0  ;;  %v696_v14 = vrot.slane %v3220_v1, %v695_v9  ;;  %v766_v28 = vrot.slane %v3220_v1, %v765_v27  ;;  %vm2396_vm14 = vcmask (!%p2591_p6), 25600  }
 0x232   : > { %v609_v57 = vpack.c.bf16 %v607_v55, %v606_v53  ;;  %2685 = vmatprep.subr.bf16.mxu0 %v2891_v56 }
 0x234   : > { %2682 = vmatmul.mubr.msk.bf16.vlgmr.msra.gmra.mrb[0].mxu0 %vm632_vm4, %v609_v57 }
 0x235   : > { %2686 = vmatpush3.bf16.msra.mxu0 %v2891_v56  ;;  %2689 = vmatprep.mubr.msk.bf16.mxu0 %vm632_vm4, %v608_v54 }
 0x236   : > { %2687 = vmatprep.subr.bf16.mxu0 %v2892_v58 }
 0x239   : > { %2688 = vmatpush3.bf16.msra.mxu0 %v2892_v58 }
 0x23a   : > { %2693 = vmatprep.subr.bf16.mxu0 %v2893_v59 }
 0x23c   : > { %2690 = vmatmul.mubr.msk.bf16.vlgmr.msra.gmra.mrb[4].mxu0 %vm632_vm4, %v609_v57 }
 0x23d   : > { %2697 = vmatprep.mubr.msk.bf16.mxu0 %vm632_vm4, %v608_v54  ;;  %2694 = vmatpush3.bf16.msra.mxu0 %v2893_v59 }
 0x23e   : > { %2695 = vmatprep.subr.bf16.mxu0 %v2894_v60 }
 0x241   : > { %2696 = vmatpush3.bf16.msra.mxu0 %v2894_v60 }
 0x242   : > { %2707 = vmatprep.subr.bf16.mxu0 %v3050_v61 }
 0x244   : > { %2698 = vmatmul.mubr.msk.bf16.vlgmr.msra.gmra.mrb[8].mxu0 %vm632_vm4, %v609_v57 }
 0x245   : > { %2709 = vmatprep.mubr.msk.bf16.mxu0 %vm3051_vm5, %v3050_v61 }
 0x307   : > { %v2683_v3 = vpop.f32.mrb[0].mxu0 }
 0x308   : > { %v673_v4 = vpop.f32.mrb[1].mxu0  ;;  %v682_v6 = vadd.f32 %v2683_v3, %v619_v2 }
 0x309   : > { %v2684_v5 = vpop.f32.mrb[2].mxu0  ;;  %v674_v10 = vadd.f32 %v673_v4, %v619_v2 }
 0x30a   : > { %v685_v7 = vadd.f32 %v2684_v5, %v619_v2  ;;  %v676_v8 = vpop.f32.mrb[3].mxu0 }
 0x30b   : > { %v677_v11 = vadd.f32 %v676_v8, %v619_v2 }
 0x30c   : > { %v3224_v12 = vpack.c.bf16 %v685_v7, %v682_v6 }
 0x30d   : > { %v3226_v13 = vpack.c.bf16 %v677_v11, %v674_v10 }
 0x30f   : > { %v2691_v15 = vpop.f32.mrb[4].mxu0 }
 0x310   : > { %v743_v16 = vpop.f32.mrb[5].mxu0  ;;  %v752_v18 = vadd.f32 %v2691_v15, %v696_v14 }
 0x311   : > { %v2692_v17 = vpop.f32.mrb[6].mxu0  ;;  %v744_v21 = vadd.f32 %v743_v16, %v696_v14 }
 0x312   : > { %v755_v19 = vadd.f32 %v2692_v17, %v696_v14  ;;  %v746_v20 = vpop.f32.mrb[7].mxu0 }
 0x313   : > { %v747_v22 = vadd.f32 %v746_v20, %v696_v14 }
 0x314   : > { %v3229_v23 = vpack.c.bf16 %v755_v19, %v752_v18 }
 0x315   : > { %v3231_v24 = vpack.c.bf16 %v747_v22, %v744_v21 }
 0x316   : > { %v889_v25 = vsel %vm837_vm6, %v3229_v23, 0 }
 0x317   : > { %2708 = vmatpush3.bf16.xpose.msra.mxu0 %v889_v25  ;;  %v842_v26 = vsel %vm837_vm6, %v3231_v24, 0  ;;  %v2699_v29 = vpop.f32.mrb[8].mxu0 }
 0x318   : > { %2702 = vmatpush3.bf16.xpose.msra.mxu1 %v842_v26  ;;  %2719 = vmatprep.subr.bf16.mxu0 %v3050_v61  ;;  %v822_v30 = vadd.f32 %v2699_v29, %v766_v28  ;;  %v813_v31 = vpop.f32.mrb[9].mxu0 }
 0x319   : > { %2713 = vmatprep.subr.bf16.mxu1 %v3050_v61  ;;  %v814_v32 = vadd.f32 %v813_v31, %v766_v28  ;;  %v2700_v33 = vpop.f32.mrb[10].mxu0 }
 0x31a   : > { %v825_v34 = vadd.f32 %v2700_v33, %v766_v28  ;;  %v816_v35 = vpop.f32.mrb[11].mxu0 }
 0x31b   : > { %v817_v36 = vadd.f32 %v816_v35, %v766_v28 }
 0x31c   : > { %v3249_v37 = vpack.c.bf16 %v825_v34, %v822_v30 }
 0x31d   : > { %v3251_v38 = vpack.c.bf16 %v817_v36, %v814_v32 }
 0x31e   : > { %2710 = vmatmul.mubr.msk.bf16.vlgmr.msra.gmra.mrb[12].mxu0 %vm837_vm6, %v3224_v12 }
 0x31f   : > { %2704 = vmatmul.mubr.msk.bf16.vlgmr.msra.gmra.mrb[0].mxu1 %vm837_vm6, %v3226_v13  ;;  %2721 = vmatprep.mubr.msk.bf16.mxu0 %vm3051_vm5, %v3050_v61 }
 0x320   : > { %2715 = vmatprep.mubr.msk.bf16.mxu1 %vm3051_vm5, %v3050_v61  ;;  %2720 = vmatpush3.bf16.msra.mxu0 %v3249_v37 }
 0x321   : > { %2714 = vmatpush3.bf16.msra.mxu1 %v3251_v38  ;;  %2731 = vmatprep.subr.bf16.mxu0 %v3050_v61 }
 0x322   : > { %2725 = vmatprep.subr.bf16.mxu1 %v3050_v61 }
 0x3f1   : > { %v925_v40 = vpop.f32.mrb[12].mxu0 }
 0x3f2   : > { %v934_v41 = vsel %vm830_vm7, %v925_v40, -1e+30  ;;  %v878_v42 = vpop.f32.mrb[0].mxu1  ;;  %v2711_v43 = vpop.f32.mrb[13].mxu0 }
 0x3f3   : > { %v932_v44 = vsel %vm830_vm7, %v878_v42, -1e+30  ;;  %v2705_v45 = vpop.f32.mrb[1].mxu1  ;;  %v928_v46 = vpop.f32.mrb[14].mxu0  ;;  %v943_v47 = vsel %vm936_vm8, %v934_v41, -inf }
 0x3f4   : > { %v935_v48 = vsel %vm830_vm7, %v928_v46, -1e+30  ;;  %944 = vmax.xlane.f32.xlu1 %v943_v47  ;;  %v881_v49 = vpop.f32.mrb[2].mxu1  ;;  %v2712_v50 = vpop.f32.mrb[15].mxu0  ;;  %v937_v51 = vsel %vm936_vm8, %v932_v44, -inf }
 0x3f5   : > { %v933_v52 = vsel %vm830_vm7, %v881_v49, -1e+30  ;;  %938 = vmax.xlane.f32.xlu0 %v937_v51  ;;  %v2706_v53 = vpop.f32.mrb[3].mxu1  ;;  %v946_v54 = vsel %vm936_vm8, %v935_v48, -inf }
 0x3f6   : > { %v940_v55 = vsel %vm936_vm8, %v933_v52, -inf }
 0x3f8   : > { %947 = vmax.xlane.f32.xlu1 %v946_v54 }
 0x3f9   : > { %941 = vmax.xlane.f32.xlu0 %v940_v55 }
 0x409   : > { %1132 = vrot.lane.b32.xlu1 %v3229_v23, %s3052_s16 }
 0x481   : > { %v945_v56 = vpop.xlane.xlu1 %944 }
 0x482   : > { %v951_v57 = vsub.f32 %v934_v41, %v945_v56  ;;  %v939_v58 = vpop.xlane.xlu0 %938 }
 0x483   : > { %v949_v59 = vsub.f32 %v932_v44, %v939_v58 }
 0x484   : > { %v957_v60 = vmul.f32 1.442695, %v951_v57 }
 0x485   : > { %v953_v62 = vmul.f32 1.442695, %v949_v59  ;;  %v948_v0 = vpop.xlane.xlu1 %947 }
 0x486   : > { %2907 = vpow2.f32 %v957_v60  ;;  %v952_v2 = vsub.f32 %v935_v48, %v948_v0  ;;  %v942_v3 = vpop.xlane.xlu0 %941 }
 0x487   : > { %v950_v4 = vsub.f32 %v933_v52, %v942_v3  ;;  %2909 = vpow2.f32 %v953_v62 }
 0x488   : > { %v959_v5 = vmul.f32 1.442695, %v952_v2 }
 0x489   : > { %v955_v6 = vmul.f32 1.442695, %v950_v4  ;;  %v1133_v17 = vpop.permute.xlu1 %1132 }
 0x48a   : > { %2911 = vpow2.f32 %v959_v5  ;;  %v1138_v31 = vsel %vm837_vm6, %v1133_v17, 0 }
 0x48b   : > { %2913 = vpow2.f32 %v955_v6 }
 0x490   : > { %v2908_v7 = vpop.eup %2907 }
 0x491   : > { %v967_v8 = vsel %vm936_vm8, %v2908_v7, 0.0  ;;  %v2910_v9 = vpop.eup %2909 }
 0x492   : > { %968 = vadd.xlane.f32.xlu0 %v967_v8  ;;  %v961_v14 = vsel %vm936_vm8, %v2910_v9, 0.0 }
 0x494   : > { %v2912_v10 = vpop.eup %2911 }
 0x495   : > { %v970_v11 = vsel %vm936_vm8, %v2912_v10, 0.0  ;;  %v2914_v15 = vpop.eup %2913 }
 0x496   : > { %971 = vadd.xlane.f32.xlu1 %v970_v11  ;;  %962 = vadd.xlane.f32.xlu0 %v961_v14  ;;  %v964_v16 = vsel %vm936_vm8, %v2914_v15, 0.0 }
 0x49a   : > { %965 = vadd.xlane.f32.xlu1 %v964_v16 }
 0x4ab   : > { %1076 = vrot.lane.b32.xlu1 %v3226_v13, %s3052_s16 }
 0x4ac   : > { %1079 = vrot.lane.b32.xlu0 %v3231_v24, %s3052_s16 }
 0x4af   : > { %1129 = vrot.lane.b32.xlu1 %v3224_v12, %s3052_s16 }
 0x51f   : > { %v969_v18 = vpop.xlane.xlu0 %968 }
 0x520   : > { %2915 = vrcp.f32 %v969_v18 }
 0x523   : > { %v972_v19 = vpop.xlane.xlu1 %971  ;;  %v963_v20 = vpop.xlane.xlu0 %962 }
 0x524   : > { %2917 = vrcp.f32 %v972_v19 }
 0x525   : > { %2919 = vrcp.f32 %v963_v20 }
 0x527   : > { %v966_v21 = vpop.xlane.xlu1 %965  ;;  %v1080_v34 = vpop.permute.xlu0 %1079 }
 0x528   : > { %2921 = vrcp.f32 %v966_v21  ;;  %v1085_v40 = vsel %vm837_vm6, %v1080_v34, 0 }
 0x52a   : > { %v2916_v22 = vpop.eup %2915 }
 0x52b   : > { %v979_v26 = vmul.f32 %v2916_v22, %v2908_v7  ;;  %v1077_v35 = vpop.permute.xlu1 %1076 }
 0x52e   : > { %v2918_v25 = vpop.eup %2917 }
 0x52f   : > { %v980_v27 = vmul.f32 %v2918_v25, %v2912_v10  ;;  %v2920_v28 = vpop.eup %2919  ;;  %v1130_v41 = vpop.permute.xlu1 %1129 }
 0x530   : > { %v977_v32 = vmul.f32 %v2920_v28, %v2910_v9 }
 0x531   : > { %v982_v29 = vpack.c.bf16 %v980_v27, %v979_v26 }
 0x532   : > { %v2922_v30 = vpop.eup %2921 }
 0x533   : > { %v978_v33 = vmul.f32 %v2922_v30, %v2914_v15  ;;  %2722 = vmatmul.mubr.msk.bf16.vlgmr.msra.gmra.mrb[16].mxu0 %vm936_vm8, %v982_v29 }
 0x534   : > { %2732 = vmatpush3.bf16.xpose.msra.mxu0 %v1138_v31  ;;  %2733 = vmatprep.mubr.msk.bf16.mxu0 %vm3051_vm5, %v3050_v61 }
 0x535   : > { %v981_v36 = vpack.c.bf16 %v978_v33, %v977_v32  ;;  %2743 = vmatprep.subr.bf16.mxu0 %v3050_v61 }
 0x537   : > { %2716 = vmatmul.mubr.msk.bf16.vlgmr.msra.gmra.mrb[4].mxu1 %vm936_vm8, %v981_v36 }
 0x538   : > { %2726 = vmatpush3.bf16.xpose.msra.mxu1 %v1085_v40  ;;  %2727 = vmatprep.mubr.msk.bf16.mxu1 %vm3051_vm5, %v3050_v61 }
 0x539   : > { %2737 = vmatprep.subr.bf16.mxu1 %v3050_v61 }
 0x53b   : > { %2734 = vmatmul.mubr.msk.bf16.vlgmr.msra.gmra.mrb[20].mxu0 %vm837_vm6, %v1130_v41 }
 0x53c   : > { %2745 = vmatprep.mubr.msk.bf16.mxu0 %vm3051_vm5, %v3050_v61 }
 0x53f   : > { %2728 = vmatmul.mubr.msk.bf16.vlgmr.msra.gmra.mrb[8].mxu1 %vm837_vm6, %v1077_v35 }
 0x540   : > { %2739 = vmatprep.mubr.msk.bf16.mxu1 %vm3051_vm5, %v3050_v61 }
 0x606   : > { %v1064_v42 = vpop.f32.mrb[16].mxu0 }
 0x607   : > { %1073 = vst.msk [vmem:[#allocation3 + $0x10] sm:$0xff] %vm837_vm6, %v1064_v42  ;;  %v2723_v43 = vpop.f32.mrb[17].mxu0 }
 0x608   : > { %v1067_v44 = vpop.f32.mrb[18].mxu0 }
 0x609   : > { %1074 = vst.msk [vmem:[#allocation3 + $0x18] sm:$0xff] %vm837_vm6, %v1067_v44  ;;  %v2724_v45 = vpop.f32.mrb[19].mxu0 }
 0x60a   : > { %v1020_v46 = vpop.f32.mrb[4].mxu1 }
 0x60b   : > { %1071 = vst.msk [vmem:[#allocation3] sm:$0xff] %vm837_vm6, %v1020_v46  ;;  %v2717_v47 = vpop.f32.mrb[5].mxu1 }
 0x60c   : > { %v1023_v48 = vpop.f32.mrb[6].mxu1 }
 0x60d   : > { %1072 = vst.msk [vmem:[#allocation3 + $0x8] sm:$0xff] %vm837_vm6, %v1023_v48  ;;  %v2718_v49 = vpop.f32.mrb[7].mxu1 }
 0x60e   : > { %v1174_v50 = vpop.f32.mrb[20].mxu0 }
 0x60f   : > { %v2735_v51 = vpop.f32.mrb[21].mxu0  ;;  %v1183_v59 = vsel %vm830_vm7, %v1174_v50, -1e+30 }
 0x610   : > { %v1177_v52 = vpop.f32.mrb[22].mxu0  ;;  %v1191_v2 = vsel %vm936_vm8, %v1183_v59, -inf }
 0x611   : > { %v2736_v53 = vpop.f32.mrb[23].mxu0  ;;  %v1184_v3 = vsel %vm830_vm7, %v1177_v52, -1e+30 }
 0x612   : > { %v1121_v54 = vpop.f32.mrb[8].mxu1  ;;  %v1194_v4 = vsel %vm936_vm8, %v1184_v3, -inf }
 0x613   : > { %v1181_v55 = vsel %vm830_vm7, %v1121_v54, -1e+30  ;;  %v2729_v56 = vpop.f32.mrb[9].mxu1 }
 0x614   : > { %v1124_v57 = vpop.f32.mrb[10].mxu1  ;;  %v1185_v58 = vsel %vm936_vm8, %v1181_v55, -inf }
 0x615   : > { %v1182_v60 = vsel %vm830_vm7, %v1124_v57, -1e+30  ;;  %1186 = vmax.xlane.f32.xlu0 %v1185_v58  ;;  %v2730_v62 = vpop.f32.mrb[11].mxu1 }
 0x616   : > { %v1188_v0 = vsel %vm936_vm8, %v1182_v60, -inf }
 0x617   : > { %1189 = vmax.xlane.f32.xlu1 %v1188_v0 }
 0x619   : > { %1192 = vmax.xlane.f32.xlu0 %v1191_v2 }
 0x61d   : > { %1195 = vmax.xlane.f32.xlu0 %v1194_v4 }
 0x628   : > { %1280 = vrot.lane.b32.xlu1 %v3249_v37, %s3052_s16 }
 0x62c   : > { %1350 = vrot.lane.b32.xlu1 %v3231_v24, %s3053_s23 }
 0x6a2   : > { %v1187_v5 = vpop.xlane.xlu0 %1186 }
 0x6a3   : > { %v1197_v7 = vsub.f32 %v1181_v55, %v1187_v5 }
 0x6a4   : > { %v1190_v6 = vpop.xlane.xlu1 %1189 }
 0x6a5   : > { %v1201_v11 = vmul.f32 1.442695, %v1197_v7  ;;  %v1198_v14 = vsub.f32 %v1182_v60, %v1190_v6 }
 0x6a6   : > { %v1193_v8 = vpop.xlane.xlu0 %1192 }
 0x6a7   : > { %v1199_v9 = vsub.f32 %v1183_v59, %v1193_v8  ;;  %v1203_v18 = vmul.f32 1.442695, %v1198_v14 }
 0x6a8   : > { %v1281_v10 = vpop.permute.xlu1 %1280 }
 0x6a9   : > { %v1205_v15 = vmul.f32 1.442695, %v1199_v9  ;;  %2744 = vmatpush3.bf16.msra.mxu0 %v1281_v10 }
 0x6aa   : > { %v1196_v16 = vpop.xlane.xlu0 %1195  ;;  %2755 = vmatprep.subr.bf16.mxu0 %v3050_v61 }
 0x6ab   : > { %2923 = vpow2.f32 %v1205_v15  ;;  %v1200_v17 = vsub.f32 %v1184_v3, %v1196_v16 }
 0x6ac   : > { %2925 = vpow2.f32 %v1201_v11  ;;  %v1351_v30 = vpop.permute.xlu1 %1350 }
 0x6ad   : > { %v1207_v19 = vmul.f32 1.442695, %v1200_v17  ;;  %v1356_v51 = vsel %vm837_vm6, %v1351_v30, 0 }
 0x6af   : > { %2927 = vpow2.f32 %v1207_v19 }
 0x6b0   : > { %2929 = vpow2.f32 %v1203_v18 }
 0x6b5   : > { %v2924_v20 = vpop.eup %2923 }
 0x6b6   : > { %v1215_v21 = vsel %vm936_vm8, %v2924_v20, 0.0  ;;  %v2926_v22 = vpop.eup %2925 }
 0x6b7   : > { %1216 = vadd.xlane.f32.xlu0 %v1215_v21  ;;  %v1209_v26 = vsel %vm936_vm8, %v2926_v22, 0.0 }
 0x6b9   : > { %v2928_v25 = vpop.eup %2927 }
 0x6ba   : > { %v1218_v27 = vsel %vm936_vm8, %v2928_v25, 0.0  ;;  %v2930_v28 = vpop.eup %2929 }
 0x6bb   : > { %1210 = vadd.xlane.f32.xlu0 %v1209_v26  ;;  %1219 = vadd.xlane.f32.xlu1 %v1218_v27  ;;  %v1212_v29 = vsel %vm936_vm8, %v2930_v28, 0.0 }
 0x6bf   : > { %1213 = vadd.xlane.f32.xlu1 %v1212_v29 }
 0x6d0   : > { %1401 = vrot.lane.b32.xlu1 %v3229_v23, %s3053_s23 }
 0x6d1   : > { %1232 = vrot.lane.b32.xlu0 %v3251_v38, %s3052_s16 }
 0x6d4   : > { %1399 = vrot.lane.b32.xlu1 %v3224_v12, %s3053_s23 }
 0x6d5   : > { %1348 = vrot.lane.b32.xlu0 %v3226_v13, %s3053_s23 }
 0x744   : > { %v1217_v31 = vpop.xlane.xlu0 %1216 }
 0x745   : > { %2931 = vrcp.f32 %v1217_v31 }
 0x748   : > { %v1211_v32 = vpop.xlane.xlu0 %1210  ;;  %v1220_v33 = vpop.xlane.xlu1 %1219 }
 0x749   : > { %2933 = vrcp.f32 %v1220_v33 }
 0x74a   : > { %2935 = vrcp.f32 %v1211_v32 }
 0x74c   : > { %v1233_v34 = vpop.permute.xlu0 %1232  ;;  %v1214_v35 = vpop.xlane.xlu1 %1213 }
 0x74d   : > { %2937 = vrcp.f32 %v1214_v35  ;;  %2738 = vmatpush3.bf16.msra.mxu1 %v1233_v34 }
 0x74e   : > { %2749 = vmatprep.subr.bf16.mxu1 %v3050_v61 }
 0x74f   : > { %v2932_v36 = vpop.eup %2931 }
 0x750   : > { %v1227_v42 = vmul.f32 %v2932_v36, %v2924_v20  ;;  %v1402_v44 = vpop.permute.xlu1 %1401  ;;  %v1349_v53 = vpop.permute.xlu0 %1348 }
 0x751   : > { %v1407_v49 = vsel %vm837_vm6, %v1402_v44, 0 }
 0x753   : > { %v2934_v40 = vpop.eup %2933 }
 0x754   : > { %v2936_v41 = vpop.eup %2935  ;;  %v1228_v43 = vmul.f32 %v2934_v40, %v2928_v25  ;;  %v1400_v52 = vpop.permute.xlu1 %1399 }
 0x755   : > { %v1225_v47 = vmul.f32 %v2936_v41, %v2926_v22 }
 0x756   : > { %v1230_v46 = vpack.c.bf16 %v1228_v43, %v1227_v42 }
 0x757   : > { %v2938_v45 = vpop.eup %2937 }
 0x758   : > { %v1226_v48 = vmul.f32 %v2938_v45, %v2930_v28  ;;  %2746 = vmatmul.mubr.msk.bf16.vlgmr.msra.gmra.mrb[24].mxu0 %vm936_vm8, %v1230_v46 }
 0x759   : > { %2756 = vmatpush3.bf16.xpose.msra.mxu0 %v1407_v49  ;;  %2757 = vmatprep.mubr.msk.bf16.mxu0 %vm3051_vm5, %v3050_v61 }
 0x75a   : > { %v1229_v50 = vpack.c.bf16 %v1226_v48, %v1225_v47  ;;  %2767 = vmatprep.subr.bf16.mxu0 %v3050_v61 }
 0x75c   : > { %2740 = vmatmul.mubr.msk.bf16.vlgmr.msra.gmra.mrb[12].mxu1 %vm936_vm8, %v1229_v50 }
 0x75d   : > { %2750 = vmatpush3.bf16.xpose.msra.mxu1 %v1356_v51  ;;  %2751 = vmatprep.mubr.msk.bf16.mxu1 %vm3051_vm5, %v3050_v61 }
 0x75e   : > { %2761 = vmatprep.subr.bf16.mxu1 %v3050_v61 }
 0x760   : > { %2758 = vmatmul.mubr.msk.bf16.vlgmr.msra.gmra.mrb[28].mxu0 %vm837_vm6, %v1400_v52 }
 0x761   : > { %2769 = vmatprep.mubr.msk.bf16.mxu0 %vm3051_vm5, %v3050_v61 }
 0x764   : > { %2752 = vmatmul.mubr.msk.bf16.vlgmr.msra.gmra.mrb[16].mxu1 %vm837_vm6, %v1349_v53 }
 0x765   : > { %2763 = vmatprep.mubr.msk.bf16.mxu1 %vm3051_vm5, %v3050_v61 }
 0x82b   : > { %v3350_v54 = vpop.f32.mrb[24].mxu0 }
 0x82c   : > { %v2747_v55 = vpop.f32.mrb[25].mxu0 }
 0x82d   : > { %v3352_v56 = vpop.f32.mrb[26].mxu0 }
 0x82e   : > { %v2748_v57 = vpop.f32.mrb[27].mxu0 }
 0x82f   : > { %v3354_v58 = vpop.f32.mrb[12].mxu1 }
 0x830   : > { %v2741_v59 = vpop.f32.mrb[13].mxu1 }
 0x831   : > { %v3356_v60 = vpop.f32.mrb[14].mxu1 }
 0x832   : > { %v2742_v62 = vpop.f32.mrb[15].mxu1 }
 0x833   : > { %v1443_v0 = vpop.f32.mrb[28].mxu0 }
 0x834   : > { %v2759_v2 = vpop.f32.mrb[29].mxu0  ;;  %v1452_v10 = vsel %vm830_vm7, %v1443_v0, -1e+30 }
 0x835   : > { %v1446_v3 = vpop.f32.mrb[30].mxu0  ;;  %v1460_v16 = vsel %vm936_vm8, %v1452_v10, -inf }
 0x836   : > { %v2760_v4 = vpop.f32.mrb[31].mxu0  ;;  %v1453_v17 = vsel %vm830_vm7, %v1446_v3, -1e+30 }
 0x837   : > { %v1392_v5 = vpop.f32.mrb[16].mxu1  ;;  %v1463_v18 = vsel %vm936_vm8, %v1453_v17, -inf }
 0x838   : > { %v1450_v6 = vsel %vm830_vm7, %v1392_v5, -1e+30  ;;  %v2753_v7 = vpop.f32.mrb[17].mxu1 }
 0x839   : > { %v1395_v8 = vpop.f32.mrb[18].mxu1  ;;  %v1454_v9 = vsel %vm936_vm8, %v1450_v6, -inf }
 0x83a   : > { %v1451_v11 = vsel %vm830_vm7, %v1395_v8, -1e+30  ;;  %1455 = vmax.xlane.f32.xlu0 %v1454_v9  ;;  %v2754_v14 = vpop.f32.mrb[19].mxu1 }
 0x83b   : > { %v1457_v15 = vsel %vm936_vm8, %v1451_v11, -inf }
 0x83c   : > { %1458 = vmax.xlane.f32.xlu1 %v1457_v15 }
 0x83e   : > { %1461 = vmax.xlane.f32.xlu0 %v1460_v16 }
 0x842   : > { %1464 = vmax.xlane.f32.xlu0 %v1463_v18 }
 0x84d   : > { %1547 = vrot.lane.b32.xlu1 %v3249_v37, %s3053_s23 }
 0x851   : > { %1617 = vrot.lane.b32.xlu1 %v3231_v24, %s3054_s26 }
 0x8c7   : > { %v1456_v19 = vpop.xlane.xlu0 %1455 }
 0x8c8   : > { %v1466_v21 = vsub.f32 %v1450_v6, %v1456_v19 }
 0x8c9   : > { %v1459_v20 = vpop.xlane.xlu1 %1458 }
 0x8ca   : > { %v1470_v27 = vmul.f32 1.442695, %v1466_v21  ;;  %v1467_v28 = vsub.f32 %v1451_v11, %v1459_v20 }
 0x8cb   : > { %v1462_v22 = vpop.xlane.xlu0 %1461 }
 0x8cc   : > { %v1468_v25 = vsub.f32 %v1452_v10, %v1462_v22  ;;  %v1472_v32 = vmul.f32 1.442695, %v1467_v28 }
 0x8cd   : > { %v1548_v26 = vpop.permute.xlu1 %1547 }
 0x8ce   : > { %v1474_v29 = vmul.f32 1.442695, %v1468_v25  ;;  %2768 = vmatpush3.bf16.msra.mxu0 %v1548_v26 }
 0x8cf   : > { %v1465_v30 = vpop.xlane.xlu0 %1464  ;;  %2779 = vmatprep.subr.bf16.mxu0 %v3050_v61 }
 0x8d0   : > { %2939 = vpow2.f32 %v1474_v29  ;;  %v1469_v31 = vsub.f32 %v1453_v17, %v1465_v30 }
 0x8d1   : > { %2941 = vpow2.f32 %v1470_v27  ;;  %v1618_v44 = vpop.permute.xlu1 %1617 }
 0x8d2   : > { %v1476_v33 = vmul.f32 1.442695, %v1469_v31  ;;  %v1623_v2 = vsel %vm837_vm6, %v1618_v44, 0 }
 0x8d4   : > { %2943 = vpow2.f32 %v1476_v33 }
 0x8d5   : > { %2945 = vpow2.f32 %v1472_v32 }
 0x8da   : > { %v2940_v24 = vpop.eup %2939 }
 0x8db   : > { %v1484_v34 = vsel %vm936_vm8, %v2940_v24, 0.0  ;;  %v2942_v35 = vpop.eup %2941 }
 0x8dc   : > { %1485 = vadd.xlane.f32.xlu0 %v1484_v34  ;;  %v1478_v40 = vsel %vm936_vm8, %v2942_v35, 0.0 }
 0x8de   : > { %v2944_v36 = vpop.eup %2943 }
 0x8df   : > { %v1487_v41 = vsel %vm936_vm8, %v2944_v36, 0.0  ;;  %v2946_v42 = vpop.eup %2945 }
 0x8e0   : > { %1479 = vadd.xlane.f32.xlu0 %v1478_v40  ;;  %1488 = vadd.xlane.f32.xlu1 %v1487_v41  ;;  %v1481_v43 = vsel %vm936_vm8, %v2946_v42, 0.0 }
 0x8e4   : > { %1482 = vadd.xlane.f32.xlu1 %v1481_v43 }
 0x8f5   : > { %1668 = vrot.lane.b32.xlu1 %v3229_v23, %s3054_s26 }
 0x8f6   : > { %1500 = vrot.lane.b32.xlu0 %v3251_v38, %s3053_s23 }
 0x8f9   : > { %1666 = vrot.lane.b32.xlu1 %v3224_v12, %s3054_s26 }
 0x8fa   : > { %1615 = vrot.lane.b32.xlu0 %v3226_v13, %s3054_s26 }
 0x969   : > { %v1486_v45 = vpop.xlane.xlu0 %1485 }
 0x96a   : > { %2947 = vrcp.f32 %v1486_v45 }
 0x96d   : > { %v1480_v46 = vpop.xlane.xlu0 %1479  ;;  %v1489_v47 = vpop.xlane.xlu1 %1488 }
 0x96e   : > { %2949 = vrcp.f32 %v1489_v47 }
 0x96f   : > { %2951 = vrcp.f32 %v1480_v46 }
 0x971   : > { %v1501_v48 = vpop.permute.xlu0 %1500  ;;  %v1483_v49 = vpop.xlane.xlu1 %1482 }
 0x972   : > { %2953 = vrcp.f32 %v1483_v49  ;;  %2762 = vmatpush3.bf16.msra.mxu1 %v1501_v48 }
 0x973   : > { %2773 = vmatprep.subr.bf16.mxu1 %v3050_v61 }
 0x974   : > { %v2948_v23 = vpop.eup %2947 }
 0x975   : > { %v1496_v12 = vmul.f32 %v2948_v23, %v2940_v24  ;;  %v1669_v53 = vpop.permute.xlu1 %1668  ;;  %v1616_v4 = vpop.permute.xlu0 %1615 }
 0x976   : > { %v1674_v62 = vsel %vm837_vm6, %v1669_v53, 0 }
 0x978   : > { %v2950_v50 = vpop.eup %2949 }
 0x979   : > { %v2952_v51 = vpop.eup %2951  ;;  %v1497_v52 = vmul.f32 %v2950_v50, %v2944_v36  ;;  %v1667_v3 = vpop.permute.xlu1 %1666 }
 0x97a   : > { %v1494_v57 = vmul.f32 %v2952_v51, %v2942_v35 }
 0x97b   : > { %v1499_v55 = vpack.c.bf16 %v1497_v52, %v1496_v12 }
 0x97c   : > { %v2954_v13 = vpop.eup %2953 }
 0x97d   : > { %v1495_v59 = vmul.f32 %v2954_v13, %v2946_v42  ;;  %2770 = vmatmul.mubr.msk.bf16.vlgmr.msra.gmra.mrb[32].mxu0 %vm936_vm8, %v1499_v55 }
 0x97e   : > { %2780 = vmatpush3.bf16.xpose.msra.mxu0 %v1674_v62  ;;  %2781 = vmatprep.mubr.msk.bf16.mxu0 %vm3051_vm5, %v3050_v61 }
 0x97f   : > { %v1498_v0 = vpack.c.bf16 %v1495_v59, %v1494_v57  ;;  %2791 = vmatprep.subr.bf16.mxu0 %v3050_v61 }
 0x981   : > { %2764 = vmatmul.mubr.msk.bf16.vlgmr.msra.gmra.mrb[20].mxu1 %vm936_vm8, %v1498_v0 }
 0x982   : > { %2774 = vmatpush3.bf16.xpose.msra.mxu1 %v1623_v2  ;;  %2775 = vmatprep.mubr.msk.bf16.mxu1 %vm3051_vm5, %v3050_v61 }
 0x983   : > { %2785 = vmatprep.subr.bf16.mxu1 %v3050_v61 }
 0x985   : > { %2782 = vmatmul.mubr.msk.bf16.vlgmr.msra.gmra.mrb[36].mxu0 %vm837_vm6, %v1667_v3 }
 0x986   : > { %2793 = vmatprep.mubr.msk.bf16.mxu0 %vm3051_vm5, %v3050_v61 }
 0x989   : > { %2776 = vmatmul.mubr.msk.bf16.vlgmr.msra.gmra.mrb[24].mxu1 %vm837_vm6, %v1616_v4 }
 0x98a   : > { %2787 = vmatprep.mubr.msk.bf16.mxu1 %vm3051_vm5, %v3050_v61 }
 0xa50   : > { %v3404_v5 = vpop.f32.mrb[32].mxu0 }
 0xa51   : > { %v2771_v6 = vpop.f32.mrb[33].mxu0 }
 0xa52   : > { %v3406_v7 = vpop.f32.mrb[34].mxu0 }
 0xa53   : > { %v2772_v8 = vpop.f32.mrb[35].mxu0 }
 0xa54   : > { %v1540_v9 = vpop.f32.mrb[20].mxu1 }
 0xa55   : > { %v2765_v10 = vpop.f32.mrb[21].mxu1 }
 0xa56   : > { %v1543_v11 = vpop.f32.mrb[22].mxu1 }
 0xa57   : > { %v2766_v14 = vpop.f32.mrb[23].mxu1 }
 0xa58   : > { %v1710_v15 = vpop.f32.mrb[36].mxu0  ;;  %v2896_v14 = vld [vmem:[%s3151_s27 + $0x38] sm:$0xff]  }
 0xa59   : > { %v2783_v16 = vpop.f32.mrb[37].mxu0  ;;  %v1719_v25 = vsel %vm830_vm7, %v1710_v15, -1e+30 }
 0xa5a   : > { %v1713_v17 = vpop.f32.mrb[38].mxu0  ;;  %v1727_v29 = vsel %vm936_vm8, %v1719_v25, -inf }
 0xa5b   : > { %v2784_v18 = vpop.f32.mrb[39].mxu0  ;;  %v1720_v30 = vsel %vm830_vm7, %v1713_v17, -1e+30 }
 0xa5c   : > { %v1659_v19 = vpop.f32.mrb[24].mxu1  ;;  %v1730_v31 = vsel %vm936_vm8, %v1720_v30, -inf }
 0xa5d   : > { %v1717_v20 = vsel %vm830_vm7, %v1659_v19, -1e+30  ;;  %v2777_v21 = vpop.f32.mrb[25].mxu1 }
 0xa5e   : > { %v1662_v61 = vpop.f32.mrb[26].mxu1  ;;  %v1721_v22 = vsel %vm936_vm8, %v1717_v20, -inf }
 0xa5f   : > { %v1718_v26 = vsel %vm830_vm7, %v1662_v61, -1e+30  ;;  %1722 = vmax.xlane.f32.xlu0 %v1721_v22  ;;  %v2778_v27 = vpop.f32.mrb[27].mxu1 }
 0xa60   : > { %v1724_v28 = vsel %vm936_vm8, %v1718_v26, -inf }
 0xa61   : > { %1725 = vmax.xlane.f32.xlu1 %v1724_v28 }
 0xa63   : > { %1728 = vmax.xlane.f32.xlu0 %v1727_v29 }
 0xa67   : > { %1731 = vmax.xlane.f32.xlu0 %v1730_v31 }
 0xaec   : > { %v1723_v32 = vpop.xlane.xlu0 %1722 }
 0xaed   : > { %v1733_v33 = vsub.f32 %v1717_v20, %v1723_v32 }
 0xaee   : > { %v1726_v24 = vpop.xlane.xlu1 %1725 }
 0xaef   : > { %v1737_v36 = vmul.f32 1.442695, %v1733_v33  ;;  %v1734_v40 = vsub.f32 %v1718_v26, %v1726_v24  ;;  %v1895_v24 = vsub.s32 3, %v3216_v63 }
 0xaf0   : > { %v1729_v34 = vpop.xlane.xlu0 %1728 }
 0xaf1   : > { %v1735_v35 = vsub.f32 %v1719_v25, %v1729_v34  ;;  %v1739_v44 = vmul.f32 1.442695, %v1734_v40  ;;  %v1896_v34 = vrot.slane %v3220_v1, %v1895_v24  ;;  %v3484_v24 = vld [vmem:[%s3170_s25] sm:$0xff] }
 0xaf3   : > { %v1741_v41 = vmul.f32 1.442695, %v1735_v35 }
 0xaf4   : > { %v1732_v42 = vpop.xlane.xlu0 %1731 }
 0xaf5   : > { %2955 = vpow2.f32 %v1741_v41  ;;  %v1736_v43 = vsub.f32 %v1720_v30, %v1732_v42 }
 0xaf6   : > { %2957 = vpow2.f32 %v1737_v36 }
 0xaf7   : > { %v1743_v45 = vmul.f32 1.442695, %v1736_v43 }
 0xaf9   : > { %2959 = vpow2.f32 %v1743_v45  ;;  %v2987_v45 = vld [vmem:[#allocation2] sm:$0xff] }
 0xafa   : > { %2961 = vpow2.f32 %v1739_v44 }
 0xaff   : > { %v2956_v39 = vpop.eup %2955 }
 0xb00   : > { %v1751_v46 = vsel %vm936_vm8, %v2956_v39, 0.0  ;;  %v2958_v47 = vpop.eup %2957 }
 0xb01   : > { %1752 = vadd.xlane.f32.xlu0 %v1751_v46  ;;  %v1745_v49 = vsel %vm936_vm8, %v2958_v47, 0.0 }
 0xb03   : > { %v2960_v48 = vpop.eup %2959 }
 0xb04   : > { %v1754_v23 = vsel %vm936_vm8, %v2960_v48, 0.0  ;;  %v2962_v50 = vpop.eup %2961 }
 0xb05   : > { %1746 = vadd.xlane.f32.xlu0 %v1745_v49  ;;  %1755 = vadd.xlane.f32.xlu1 %v1754_v23  ;;  %v1748_v51 = vsel %vm936_vm8, %v2962_v50, 0.0  ;;  %v2989_v23 = vld [vmem:[#allocation2 + $0x10] sm:$0xff] }
 0xb09   : > { %1749 = vadd.xlane.f32.xlu1 %v1748_v51 }
 0xb1a   : > { %1814 = vrot.lane.b32.xlu1 %v3249_v37, %s3054_s26 }
 0xb1b   : > { %1767 = vrot.lane.b32.xlu0 %v3251_v38, %s3054_s26 }
 0xb1e   : > { %1331 = vrot.lane.b32.xlu1 %v3354_v58, %s3055_s18 }
 0xb1f   : > { %1335 = vrot.lane.b32.xlu0 %v3350_v54, %s3055_s18 }
 0xb22   : > { %1333 = vrot.lane.b32.xlu1 %v3356_v60, %s3055_s18 }
 0xb23   : > { %1598 = vrot.lane.b32.xlu0 %v1540_v9, %s3056_s21 }
 0xb26   : > { %1337 = vrot.lane.b32.xlu1 %v3352_v56, %s3055_s18 }
 0xb27   : > { %1602 = vrot.lane.b32.xlu0 %v3404_v5, %s3056_s21 }
 0xb2a   : > { %1600 = vrot.lane.b32.xlu1 %v1543_v11, %s3056_s21  ;;  %v2895_v11 = vld [vmem:[%s3151_s27 + $0x30] sm:$0xff]  }
 0xb2e   : > { %1604 = vrot.lane.b32.xlu1 %v3406_v7, %s3056_s21 }
 0xb8e   : > { %v1753_v37 = vpop.xlane.xlu0 %1752 }
 0xb8f   : > { %2963 = vrcp.f32 %v1753_v37  ;;  %v2990_v37 = vld [vmem:[#allocation2 + $0x18] sm:$0xff] }
 0xb92   : > { %v1747_v12 = vpop.xlane.xlu0 %1746  ;;  %v1756_v38 = vpop.xlane.xlu1 %1755 }
 0xb93   : > { %2965 = vrcp.f32 %v1756_v38 }
 0xb94   : > { %2967 = vrcp.f32 %v1747_v12 }
 0xb96   : > { %v1768_v58 = vpop.permute.xlu0 %1767  ;;  %v1750_v52 = vpop.xlane.xlu1 %1749 }
 0xb97   : > { %2969 = vrcp.f32 %v1750_v52  ;;  %2786 = vmatpush3.bf16.msra.mxu1 %v1768_v58 }
 0xb98   : > { %2797 = vmatprep.subr.bf16.mxu1 %v2895_v11 }
 0xb99   : > { %v2964_v56 = vpop.eup %2963 }
 0xb9a   : > { %v1336_v54 = vpop.permute.xlu0 %1335  ;;  %v1815_v60 = vpop.permute.xlu1 %1814  ;;  %v1763_v59 = vmul.f32 %v2964_v56, %v2956_v39 }
 0xb9b   : > { %1346 = vst.msk [vmem:[#allocation3 + $0x10] sm:$0xff] %vm1343_vm9, %v1336_v54  ;;  %2792 = vmatpush3.bf16.msra.mxu0 %v1815_v60 }
 0xb9d   : > { %v2966_v53 = vpop.eup %2965 }
 0xb9e   : > { %v1599_v13 = vpop.permute.xlu0 %1598  ;;  %v1332_v55 = vpop.permute.xlu1 %1331  ;;  %v1764_v62 = vmul.f32 %v2966_v53, %v2960_v48  ;;  %v2988_v48 = vld [vmem:[#allocation2 + $0x8] sm:$0xff] }
 0xb9f   : > { %v2968_v57 = vpop.eup %2967  ;;  %1344 = vst.msk [vmem:[#allocation3] sm:$0xff] %vm1343_vm9, %v1332_v55 }
 0xba0   : > { %1611 = vst.msk [vmem:[#allocation3] sm:$0xff] %vm1610_vm10, %v1599_v13  ;;  %v1766_v2 = vpack.c.bf16 %v1764_v62, %v1763_v59  ;;  %v1761_v3 = vmul.f32 %v2968_v57, %v2958_v47 }
 0xba1   : > { %v2970_v0 = vpop.eup %2969 }
 0xba2   : > { %v1762_v4 = vmul.f32 %v2970_v0, %v2962_v50  ;;  %v1603_v5 = vpop.permute.xlu0 %1602  ;;  %v1334_v6 = vpop.permute.xlu1 %1333  ;;  %2794 = vmatmul.mubr.msk.bf16.vlgmr.msra.gmra.mrb[40].mxu0 %vm936_vm8, %v1766_v2 }
 0xba3   : > { %1613 = vst.msk [vmem:[#allocation3 + $0x10] sm:$0xff] %vm1610_vm10, %v1603_v5 }
 0xba4   : > { %1345 = vst.msk [vmem:[#allocation3 + $0x8] sm:$0xff] %vm1343_vm9, %v1334_v6  ;;  %v1765_v7 = vpack.c.bf16 %v1762_v4, %v1761_v3 }
 0xba6   : > { %2788 = vmatmul.mubr.msk.bf16.vlgmr.msra.gmra.mrb[28].mxu1 %vm936_vm8, %v1765_v7  ;;  %v1338_v8 = vpop.permute.xlu1 %1337 }
 0xba7   : > { %1347 = vst.msk [vmem:[#allocation3 + $0x18] sm:$0xff] %vm1343_vm9, %v1338_v8  ;;  %2798 = vmatpush3.bf16.msra.mxu1 %v2895_v11  ;;  %v2898_v11 = vld [vmem:[%s3156_s30 + $0x8] sm:$0xff]  }
 0xba8   : > { %2799 = vmatprep.subr.bf16.mxu1 %v2896_v14 }
 0xbaa   : > { %v1601_v9 = vpop.permute.xlu1 %1600 }
 0xbab   : > { %1612 = vst.msk [vmem:[#allocation3 + $0x8] sm:$0xff] %vm1610_vm10, %v1601_v9  ;;  %2800 = vmatpush3.bf16.msra.mxu1 %v2896_v14  ;;  %v2899_v14 = vld [vmem:[%s3165_s20] sm:$0xff]  }
 0xbac   : > { %2813 = vmatprep.subr.bf16.mxu1 %v2899_v14 }
 0xbae   : > { %v1605_v10 = vpop.permute.xlu1 %1604 }
 0xbaf   : > { %1614 = vst.msk [vmem:[#allocation3 + $0x18] sm:$0xff] %vm1610_vm10, %v1605_v10  ;;  %v2897_v10 = vld [vmem:[%s3156_s30] sm:$0xff]  }
 0xbb0   : > { %2805 = vmatprep.subr.bf16.mxu0 %v2897_v10 }
 0xbb1   : > { %2806 = vmatpush3.bf16.msra.mxu0 %v2897_v10 }
 0xbb2   : > { %2807 = vmatprep.subr.bf16.mxu0 %v2898_v11 }
 0xbb5   : > { %2808 = vmatpush3.bf16.msra.mxu0 %v2898_v11 }
 0xc75   : > { %v1854_v15 = vpop.f32.mrb[40].mxu0 }
 0xc76   : > { %v2795_v16 = vpop.f32.mrb[41].mxu0 }
 0xc77   : > { %v1857_v17 = vpop.f32.mrb[42].mxu0  ;;  %v2901_v16 = vld [vmem:[%s3165_s20 + $0x10] sm:$0xff]  }
 0xc78   : > { %v2796_v18 = vpop.f32.mrb[43].mxu0 }
 0xc79   : > { %v1807_v19 = vpop.f32.mrb[28].mxu1  ;;  %v2903_v18 = vld [vmem:[%s3165_s20 + $0x20] sm:$0xff]  }
 0xc7a   : > { %1865 = vrot.lane.b32.xlu0 %v1807_v19, %s3057_s24  ;;  %v2789_v20 = vpop.f32.mrb[29].mxu1  ;;  %v2904_v19 = vld [vmem:[%s3165_s20 + $0x28] sm:$0xff]  }
 0xc7b   : > { %v1810_v21 = vpop.f32.mrb[30].mxu1 }
 0xc7c   : > { %1867 = vrot.lane.b32.xlu1 %v1810_v21, %s3057_s24  ;;  %v2790_v61 = vpop.f32.mrb[31].mxu1 }
 0xc7e   : > { %1869 = vrot.lane.b32.xlu0 %v1854_v15, %s3057_s24  ;;  %v2900_v15 = vld [vmem:[%s3165_s20 + $0x8] sm:$0xff]  }
 0xc80   : > { %1871 = vrot.lane.b32.xlu1 %v1857_v17, %s3057_s24  ;;  %v2902_v17 = vld [vmem:[%s3165_s20 + $0x18] sm:$0xff]  }
 0xcec   : > { %v1866_v22 = vpop.permute.xlu0 %1865 }
 0xced   : > { %1878 = vst.msk [vmem:[#allocation3] sm:$0xff] %vm1877_vm11, %v1866_v22 }
 0xcee   : > { %v1868_v25 = vpop.permute.xlu1 %1867 }
 0xcef   : > { %1879 = vst.msk [vmem:[#allocation3 + $0x8] sm:$0xff] %vm1877_vm11, %v1868_v25 }
 0xcf0   : > { %v1870_v26 = vpop.permute.xlu0 %1869 }
 0xcf1   : > { %1880 = vst.msk [vmem:[#allocation3 + $0x10] sm:$0xff] %vm1877_vm11, %v1870_v26 }
 0xcf2   : > { %v1872_v27 = vpop.permute.xlu1 %1871 }
 0xcf3   : > { %1881 = vst.msk [vmem:[#allocation3 + $0x18] sm:$0xff] %vm1877_vm11, %v1872_v27 }
 0xcf4   : > { %v1882_v28 = vld [vmem:[#allocation3] sm:$0xff] }
 0xcf6   : > { %v1883_v29 = vld [vmem:[#allocation3 + $0x8] sm:$0xff] }
 0xcf7   : > { %v1891_v30 = vpack.c.bf16 %v1883_v29, %v1882_v28 }
 0xcf8   : > { %v1884_v31 = vld [vmem:[#allocation3 + $0x10] sm:$0xff] }
 0xcf9   : > { %2801 = vmatprep.mubr.msk.bf16.mxu1 %vm632_vm4, %v1891_v30 }
 0xcfa   : > { %v1885_v32 = vld [vmem:[#allocation3 + $0x18] sm:$0xff] }
 0xcfb   : > { %v1892_v33 = vpack.c.bf16 %v1885_v32, %v1884_v31  ;;  %v2023_v32 = vsub.s32 5, %v3216_v63 }
 0xcfd   : > { %2802 = vmatmul.mubr.msk.bf16.vlgmr.msra.gmra.mrb[32].mxu1 %vm632_vm4, %v1892_v33 }
 0xcfe   : > { %2814 = vmatpush3.bf16.msra.mxu1 %v2899_v14 }
 0xcff   : > { %2815 = vmatprep.subr.bf16.mxu1 %v2900_v15 }
 0xd02   : > { %2816 = vmatpush3.bf16.msra.mxu1 %v2900_v15 }
 0xd03   : > { %2817 = vmatprep.subr.bf16.mxu1 %v2901_v16 }
 0xd06   : > { %2818 = vmatpush3.bf16.msra.mxu1 %v2901_v16 }
 0xd07   : > { %2819 = vmatprep.subr.bf16.mxu1 %v2902_v17 }
 0xd0a   : > { %2820 = vmatpush3.bf16.msra.mxu1 %v2902_v17 }
 0xd0b   : > { %2821 = vmatprep.subr.bf16.mxu1 %v2903_v18 }
 0xd0e   : > { %2822 = vmatpush3.bf16.msra.mxu1 %v2903_v18 }
 0xd0f   : > { %2823 = vmatprep.subr.bf16.mxu1 %v2904_v19 }
 0xd12   : > { %2824 = vmatpush3.bf16.msra.mxu1 %v2904_v19 }
 0xdd0   : > { %v2803_v35 = vpop.f32.mrb[32].mxu1 }
 0xdd1   : > { %v1949_v36 = vpop.f32.mrb[33].mxu1  ;;  %v1958_v40 = vadd.f32 %v2803_v35, %v1896_v34  ;;  %v2031_v35 = vsub.s32 6, %v3216_v63 }
 0xdd2   : > { %v1950_v41 = vadd.f32 %v1949_v36, %v1896_v34  ;;  %v2804_v42 = vpop.f32.mrb[34].mxu1 }
 0xdd3   : > { %v1952_v43 = vpop.f32.mrb[35].mxu1  ;;  %v1961_v46 = vadd.f32 %v2804_v42, %v1896_v34  ;;  %v1966_v50 = vadd.f32 %v2989_v23, %v1958_v40 }
 0xdd4   : > { %v1953_v44 = vadd.f32 %v1952_v43, %v1896_v34  ;;  %v1964_v39 = vadd.f32 %v2987_v45, %v1950_v41  ;;  %v2024_v34 = vrot.slane %v3484_v24, %v2023_v32 }
 0xdd5   : > { %v1974_v1 = vsel %vm632_vm4, %v1966_v50, 0.0  ;;  %v1967_v12 = vadd.f32 %v2990_v37, %v1961_v46 }
 0xdd6   : > { %v1968_v47 = vsel %vm632_vm4, %v1964_v39, 0.0  ;;  %v1965_v49 = vadd.f32 %v2988_v48, %v1953_v44  ;;  %v2032_v44 = vrot.slane %v3484_v24, %v2031_v35 }
 0xdd7   : > { %1969 = vadd.xlane.f32.xlu0 %v1968_v47  ;;  %v1977_v38 = vsel %vm632_vm4, %v1967_v12, 0.0 }
 0xdd8   : > { %v1971_v51 = vsel %vm632_vm4, %v1965_v49, 0.0 }
 0xdd9   : > { %1972 = vadd.xlane.f32.xlu1 %v1971_v51 }
 0xddb   : > { %1975 = vadd.xlane.f32.xlu0 %v1974_v1 }
 0xddf   : > { %1978 = vadd.xlane.f32.xlu0 %v1977_v38 }
 0xe64   : > { %v1970_v58 = vpop.xlane.xlu0 %1969 }
 0xe65   : > { %v1981_v52 = vmul.f32 0.03125, %v1970_v58  ;;  %v2905_v58 = vld [vmem:[%s3165_s20 + $0x30] sm:$0xff]  }
 0xe66   : > { %v1973_v54 = vpop.xlane.xlu1 %1972  ;;  %2825 = vmatprep.subr.bf16.mxu1 %v2905_v58 }
 0xe67   : > { %v3454_v60 = vsub.f32 %v1964_v39, %v1981_v52  ;;  %v1982_v56 = vmul.f32 0.03125, %v1973_v54  ;;  %2826 = vmatpush3.bf16.msra.mxu1 %v2905_v58  ;;  %v2906_v52 = vld [vmem:[%s3165_s20 + $0x38] sm:$0xff]   ;;  %v2577_v54 = vld [vmem:[%s475_s14] ss:$0 sm:$0xff] }
 0xe68   : > { %v1976_v53 = vpop.xlane.xlu0 %1975  ;;  %2827 = vmatprep.subr.bf16.mxu1 %v2906_v52 }
 0xe69   : > { %v3456_v13 = vsub.f32 %v1965_v49, %v1982_v56  ;;  %v1983_v55 = vmul.f32 0.03125, %v1976_v53  ;;  %v1989_v57 = vmul.f32 %v3454_v60, %v3454_v60 }
 0xe6b   : > { %v3460_v59 = vsub.f32 %v1966_v50, %v1983_v55  ;;  %v1993_v62 = vsel %vm632_vm4, %v1989_v57, 0.0  ;;  %v1990_v0 = vmul.f32 %v3456_v13, %v3456_v13  ;;  %2828 = vmatpush3.bf16.msra.mxu1 %v2906_v52 }
 0xe6c   : > { %1994 = vadd.xlane.f32.xlu0 %v1993_v62  ;;  %v1979_v2 = vpop.xlane.xlu0 %1978 }
 0xe6d   : > { %v1984_v3 = vmul.f32 0.03125, %v1979_v2  ;;  %v1996_v4 = vsel %vm632_vm4, %v1990_v0, 0.0  ;;  %v1991_v5 = vmul.f32 %v3460_v59, %v3460_v59 }
 0xe6e   : > { %1997 = vadd.xlane.f32.xlu1 %v1996_v4 }
 0xe6f   : > { %v3468_v6 = vsub.f32 %v1967_v12, %v1984_v3  ;;  %v1999_v7 = vsel %vm632_vm4, %v1991_v5, 0.0 }
 0xe70   : > { %2000 = vadd.xlane.f32.xlu0 %v1999_v7  ;;  %v2141_v7 = vsub.s32 4, %v3216_v63 }
 0xe71   : > { %v1992_v8 = vmul.f32 %v3468_v6, %v3468_v6 }
 0xe73   : > { %v2002_v9 = vsel %vm632_vm4, %v1992_v8, 0.0  ;;  %v2142_v8 = vrot.slane %v3484_v24, %v2141_v7 }
 0xe74   : > { %2003 = vadd.xlane.f32.xlu1 %v2002_v9 }
 0xef9   : > { %v1995_v20 = vpop.xlane.xlu0 %1994 }
 0xefa   : > { %v2005_v21 = vmul.f32 0.03125, %v1995_v20 }
 0xefb   : > { %v1998_v61 = vpop.xlane.xlu1 %1997 }
 0xefc   : > { %v2009_v22 = vadd.f32 1e-05, %v2005_v21  ;;  %v2006_v25 = vmul.f32 0.03125, %v1998_v61 }
 0xefd   : > { %v2001_v26 = vpop.xlane.xlu0 %2000 }
 0xefe   : > { %2971 = vrsqrt.f32 %v2009_v22  ;;  %v2010_v27 = vadd.f32 1e-05, %v2006_v25  ;;  %v2007_v28 = vmul.f32 0.03125, %v2001_v26 }
 0xf00   : > { %2973 = vrsqrt.f32 %v2010_v27  ;;  %v2011_v29 = vadd.f32 1e-05, %v2007_v28 }
 0xf01   : > { %v2004_v30 = vpop.xlane.xlu1 %2003 }
 0xf02   : > { %2975 = vrsqrt.f32 %v2011_v29  ;;  %v2008_v31 = vmul.f32 0.03125, %v2004_v30 }
 0xf04   : > { %v2012_v33 = vadd.f32 1e-05, %v2008_v31 }
 0xf06   : > { %2977 = vrsqrt.f32 %v2012_v33 }
 0xf08   : > { %v2972_v36 = vpop.eup %2971 }
 0xf09   : > { %v2017_v40 = vmul.f32 %v2972_v36, %v3454_v60 }
 0xf0a   : > { %v2974_v41 = vpop.eup %2973 }
 0xf0b   : > { %v2018_v42 = vmul.f32 %v2974_v41, %v3456_v13  ;;  %v2025_v43 = vmul.f32 %v2024_v34, %v2017_v40 }
 0xf0c   : > { %v2976_v45 = vpop.eup %2975 }
 0xf0d   : > { %v2019_v39 = vmul.f32 %v2976_v45, %v3460_v59  ;;  %v2026_v46 = vmul.f32 %v2024_v34, %v2018_v42  ;;  %v2033_v47 = vadd.f32 %v2032_v44, %v2025_v43 }
 0xf0f   : > { %v2034_v48 = vadd.f32 %v2032_v44, %v2026_v46  ;;  %v2027_v23 = vmul.f32 %v2024_v34, %v2019_v39 }
 0xf10   : > { %v2978_v49 = vpop.eup %2977 }
 0xf11   : > { %v2020_v50 = vmul.f32 %v2978_v49, %v3468_v6  ;;  %v2041_v51 = vpack.c.bf16 %v2034_v48, %v2033_v47  ;;  %v2035_v37 = vadd.f32 %v2032_v44, %v2027_v23 }
 0xf13   : > { %v2028_v1 = vmul.f32 %v2024_v34, %v2020_v50  ;;  %2809 = vmatprep.mubr.msk.bf16.mxu0 %vm632_vm4, %v2041_v51 }
 0xf15   : > { %v2036_v12 = vadd.f32 %v2032_v44, %v2028_v1 }
 0xf17   : > { %v2042_v38 = vpack.c.bf16 %v2036_v12, %v2035_v37 }
 0xf19   : > { %2810 = vmatmul.mubr.msk.bf16.vlgmr.msra.gmra.mrb[44].mxu0 %vm632_vm4, %v2042_v38 }
 0xfec   : > { %v2811_v60 = vpop.f32.mrb[44].mxu0 }
 0xfed   : > { %v2111_v56 = vadd.f32 %v2811_v60, %v2577_v54  ;;  %v2102_v53 = vpop.f32.mrb[45].mxu0 }
 0xfee   : > { %v2103_v13 = vadd.f32 %v2577_v54, %v2102_v53  ;;  %v2812_v55 = vpop.f32.mrb[46].mxu0  ;;  %v2298_v53 = vsub.s32 7, %v3216_v63 }
 0xfef   : > { %v2114_v57 = vadd.f32 %v2812_v55, %v2577_v54  ;;  %v2105_v59 = vpop.f32.mrb[47].mxu0  ;;  %v2119_v0 = vmax.f32 %v2111_v56, 0.0 }
 0xff0   : > { %v2106_v62 = vadd.f32 %v2577_v54, %v2105_v59  ;;  %v2117_v3 = vmax.f32 %v2103_v13, 0.0  ;;  %v2299_v13 = vrot.slane %v3484_v24, %v2298_v53 }
 0xff1   : > { %v2120_v2 = vmax.f32 %v2114_v57, 0.0 }
 0xff2   : > { %v2118_v4 = vmax.f32 %v2106_v62, 0.0  ;;  %v2590_v62 = vld [vmem:[%s3170_s25 + $0x8] ss:$0 sm:$0xff] }
 0xff3   : > { %v2138_v5 = vpack.c.bf16 %v2120_v2, %v2119_v0 }
 0xff4   : > { %v2137_v6 = vpack.c.bf16 %v2118_v4, %v2117_v3 }
 0xff6   : > { %2829 = vmatprep.mubr.bf16.mxu1 %v2137_v6 }
 0xff7   : > { %2830 = vmatmul.mubr.bf16.vlgmr.msra.gmra.mrb[36].mxu1 %v2138_v5 }
0x10ca   : > { %v2831_v9 = vpop.f32.mrb[36].mxu1 }
0x10cb   : > { %v2225_v10 = vpop.f32.mrb[37].mxu1  ;;  %v2234_v11 = vadd.f32 %v2831_v9, %v2142_v8 }
0x10cc   : > { %v2226_v14 = vadd.f32 %v2225_v10, %v2142_v8  ;;  %v2832_v15 = vpop.f32.mrb[38].mxu1 }
0x10cd   : > { %v2228_v16 = vpop.f32.mrb[39].mxu1  ;;  %v2237_v17 = vadd.f32 %v2832_v15, %v2142_v8  ;;  %v2242_v61 = vadd.f32 %v2234_v11, %v2035_v37 }
0x10ce   : > { %v2229_v18 = vadd.f32 %v2228_v16, %v2142_v8  ;;  %v2240_v19 = vadd.f32 %v2226_v14, %v2033_v47  ;;  %v2992_v14 = vld [vmem:[%s3576_s9] sm:$0xff] (!%p2591_p6)  }
0x10cf   : > { %v2243_v25 = vadd.f32 %v2237_v17, %v2036_v12  ;;  %v2250_v26 = vsel %vm632_vm4, %v2242_v61, 0.0  ;;  %v3058_v17 = vmov (!%p2591_p6), 0.0  }
0x10d0   : > { %v2244_v20 = vsel %vm632_vm4, %v2240_v19, 0.0  ;;  %v2241_v21 = vadd.f32 %v2229_v18, %v2034_v48  ;;  %2833 = vmatprep.subr.bf16.mxu0 (!%p2591_p6), %v3058_v17  ;;  %v2993_v18 = vld [vmem:[%s3576_s9 + $0x8] sm:$0xff] (!%p2591_p6)   ;;  %2837 = vmatprep.mubr.msk.bf16.mxu0 (!%p2591_p6), %vm3059_vm12, %v3058_v17 }
0x10d1   : > { %2245 = vadd.xlane.f32.xlu0 %v2244_v20  ;;  %v2253_v27 = vsel %vm632_vm4, %v2243_v25, 0.0  ;;  %2834 = vmatpush3.bf16.msra.mxu0 (!%p2591_p6), %v2992_v14 }
0x10d2   : > { %v2247_v22 = vsel %vm632_vm4, %v2241_v21, 0.0  ;;  %2835 = vmatprep.subr.bf16.mxu0 (!%p2591_p6), %v3058_v17 }
0x10d3   : > { %2248 = vadd.xlane.f32.xlu1 %v2247_v22 }
0x10d5   : > { %2251 = vadd.xlane.f32.xlu0 %v2250_v26  ;;  %2836 = vmatpush3.bf16.msra.mxu0 (!%p2591_p6), %v2993_v18 }
0x10d7   : > { %2254 = vadd.xlane.f32.xlu1 %v2253_v27 }
0x115e   : > { %v2246_v28 = vpop.xlane.xlu0 %2245 }
0x115f   : > { %v2256_v29 = vmul.f32 0.03125, %v2246_v28 }
0x1160   : > { %v2249_v30 = vpop.xlane.xlu1 %2248 }
0x1161   : > { %v2260_v31 = vsub.f32 %v2240_v19, %v2256_v29  ;;  %v2257_v32 = vmul.f32 0.03125, %v2249_v30 }
0x1162   : > { %v2252_v33 = vpop.xlane.xlu0 %2251 }
0x1163   : > { %v2261_v34 = vsub.f32 %v2241_v21, %v2257_v32  ;;  %v2258_v35 = vmul.f32 0.03125, %v2252_v33  ;;  %v2264_v36 = vmul.f32 %v2260_v31, %v2260_v31 }
0x1164   : > { %v2255_v40 = vpop.xlane.xlu1 %2254 }
0x1165   : > { %v2262_v41 = vsub.f32 %v2242_v61, %v2258_v35  ;;  %v2259_v42 = vmul.f32 0.03125, %v2255_v40  ;;  %v2268_v43 = vsel %vm632_vm4, %v2264_v36, 0.0  ;;  %v2265_v44 = vmul.f32 %v2261_v34, %v2261_v34 }
0x1166   : > { %2269 = vadd.xlane.f32.xlu0 %v2268_v43 }
0x1167   : > { %v2263_v45 = vsub.f32 %v2243_v25, %v2259_v42  ;;  %v2271_v39 = vsel %vm632_vm4, %v2265_v44, 0.0  ;;  %v2266_v46 = vmul.f32 %v2262_v41, %v2262_v41  ;;  %v2592_v25 = vld [vmem:[%s3577_s10] ss:$0 sm:$0xff] (!%p2591_p6) }
0x1168   : > { %2272 = vadd.xlane.f32.xlu1 %v2271_v39 }
0x1169   : > { %v2274_v47 = vsel %vm632_vm4, %v2266_v46, 0.0  ;;  %v2267_v48 = vmul.f32 %v2263_v45, %v2263_v45 }
0x116a   : > { %2275 = vadd.xlane.f32.xlu0 %v2274_v47 }
0x116b   : > { %v2277_v49 = vsel %vm632_vm4, %v2267_v48, 0.0 }
0x116c   : > { %2278 = vadd.xlane.f32.xlu1 %v2277_v49 }
0x11f3   : > { %v2270_v23 = vpop.xlane.xlu0 %2269 }
0x11f4   : > { %v2280_v50 = vmul.f32 0.03125, %v2270_v23 }
0x11f5   : > { %v2273_v51 = vpop.xlane.xlu1 %2272 }
0x11f6   : > { %v2284_v1 = vadd.f32 1e-05, %v2280_v50  ;;  %v2281_v37 = vmul.f32 0.03125, %v2273_v51 }
0x11f7   : > { %v2276_v12 = vpop.xlane.xlu0 %2275 }
0x11f8   : > { %2979 = vrsqrt.f32 %v2284_v1  ;;  %v2285_v38 = vadd.f32 1e-05, %v2281_v37  ;;  %v2282_v58 = vmul.f32 0.03125, %v2276_v12 }
0x11f9   : > { %v2279_v52 = vpop.xlane.xlu1 %2278 }
0x11fa   : > { %2981 = vrsqrt.f32 %v2285_v38  ;;  %v2286_v54 = vadd.f32 1e-05, %v2282_v58  ;;  %v2283_v60 = vmul.f32 0.03125, %v2279_v52 }
0x11fc   : > { %2983 = vrsqrt.f32 %v2286_v54  ;;  %v2287_v56 = vadd.f32 1e-05, %v2283_v60 }
0x11fe   : > { %2985 = vrsqrt.f32 %v2287_v56 }
0x1202   : > { %v2980_v55 = vpop.eup %2979 }
0x1203   : > { %v2292_v57 = vmul.f32 %v2980_v55, %v2260_v31 }
0x1204   : > { %v2982_v59 = vpop.eup %2981 }
0x1205   : > { %v2300_v0 = vmul.f32 %v2299_v13, %v2292_v57  ;;  %v2293_v2 = vmul.f32 %v2982_v59, %v2261_v34 }
0x1206   : > { %v2984_v3 = vpop.eup %2983 }
0x1207   : > { %v2308_v4 = vadd.f32 %v2590_v62, %v2300_v0  ;;  %v2301_v5 = vmul.f32 %v2299_v13, %v2293_v2  ;;  %v2294_v6 = vmul.f32 %v2984_v3, %v2262_v41 }
0x1208   : > { %v2986_v7 = vpop.eup %2985 }
0x1209   : > { %2312 = vst.msk [vmem:[#allocation2] sm:$0xff] %vm632_vm4, %v2308_v4  ;;  %v2309_v8 = vadd.f32 %v2590_v62, %v2301_v5  ;;  %v2302_v9 = vmul.f32 %v2299_v13, %v2294_v6  ;;  %v2295_v10 = vmul.f32 %v2986_v7, %v2263_v45  ;;  %2319 = sbr.rel (%p2591_p6) target bundleno = 4847 (0x12ef), region = 72 }
0x120b   : > { %2313 = vst.msk [vmem:[#allocation2 + $0x8] sm:$0xff] %vm632_vm4, %v2309_v8  ;;  %v2310_v63 = vadd.f32 %v2590_v62, %v2302_v9  ;;  %v2303_v24 = vmul.f32 %v2299_v13, %v2295_v10  ;;  %v2324_v15 = vpack.c.bf16 (!%p2591_p6), %v2309_v8, %v2309_v8 }
0x120d   : > { %2314 = vst.msk [vmem:[#allocation2 + $0x10] sm:$0xff] %vm632_vm4, %v2310_v63  ;;  %v2311_v11 = vadd.f32 %v2590_v62, %v2303_v24  ;;  %v2335_v19 = vunpack.c.l.b16 (!%p2591_p6), %v2324_v15 }
0x120f   : > { %2315 = vst.msk [vmem:[#allocation2 + $0x18] sm:$0xff] %vm632_vm4, %v2311_v11  ;;  %v2325_v16 = vpack.c.bf16 (!%p2591_p6), %v2311_v11, %v2311_v11 }
0x1211   : > { %v2336_v20 = vunpack.c.l.b16 %v2325_v16 }
0x1213   : > { %v2337_v21 = vrot.slane %v2336_v20, 7 }
0x1215   : > { %v2339_v61 = vsel %vm2338_vm13, %v2337_v21, %v2335_v19 }
0x1216   : > { %v2340_v22 = vpack.c.b16 %v2339_v61, %v2339_v61 }
0x1218   : > { %2838 = vmatmul.mubr.msk.bf16.vlgmr.msra.gmra.mrb[0].mxu0 %vm632_vm4, %v2340_v22 }
0x12eb   : > { %v2390_v26 = vpop.f32.mrb[0].mxu0 }
0x12ec   : > { %v2391_v27 = vadd.f32 %v2592_v25, %v2390_v26  ;;  %v2839_v28 = vpop.f32.mrb[1].mxu0 }
0x12ed   : > { %v2393_v29 = vpop.f32.mrb[2].mxu0 }
0x12ee   : > { %2397 = vst.msk [vmem:[#allocation4] sm:$0x3] %vm2396_vm14, %v2391_v27  ;;  %v2840_v30 = vpop.f32.mrb[3].mxu0 }
0x12ef PF: > { %s3582_s29 = sadd.s32 4294967295, %s3046_s19   ;;  %s3060_s13 = smov [#allocation4]  }
0x12f0   : > { %p3532_p7 = scmp.eq.s32.totalorder %s3582_s29, 1  ;;  %s2407_s15 = sshll.u32 %s3060_s13, 4  ;;  %s2408_s15 = int_to_ptr.vmem [resolvable:$true] %s2407_s15 }
0x12f1   : > { %s2994_s16 = scalar_lea.vmem %s2408_s15, 32  ;;  %p3001_p11 = scmp.lt.s32.totalorder %s2408_s15, %s2408_s15 }
0x12f2   : > { %p2995_p8 = scmp.ne.s32.totalorder %s2408_s15, %s2994_s16  ;;  %p3002_p12 = scmp.lt.s32.totalorder %s2994_s16, %s2994_s16 }
0x12f4   : > { %p2996_p9 = pnand %p2995_p8, %p3532_p7  ;;  %p3003_p13 = por %p3002_p12, %p3001_p11 }
0x12f6   : > { %p2997_p10 = pneg %p2996_p9 }
0x12f8   : > { %p3004_p0 = pnand %p3003_p13, %p2997_p10 }
0x12fa   : > { %3007 = shalt.err (!%p3004_p0)
}
0x12fb   : > { %s3008_s18 = scalar_lea.hbm %s3578_s11, 32 }
0x12fc   : > { %p3009_p1 = scmp.ne.s32.totalorder %s3578_s11, %s3008_s18  ;;  %p3014_p4 = scmp.lt.u32.totalorder %s3008_s18, %s3578_s11 }
0x12fe   : > { %p3010_p2 = pnand %p3009_p1, %p3532_p7 }
0x1300   : > { %p3011_p3 = pneg %p3010_p2 }
0x1302   : > { %p3016_p5 = pnand %p3014_p4, %p3011_p3 }
0x1304   : > { %3019 = shalt.err (!%p3016_p5)
}
0x1305   : > { %2842 = dma.vmem_to_hbm [thread:$0]  (%p3532_p7), %s2408_s15, 32, %s3578_s11, [#allocation5]  }
0x1306   : > { %3033 = dma.done.wait (%p3532_p7), [#allocation5], 32  }
0x1307   : > { %3035 = vsyncadd (%p3532_p7), [#allocation5], 4294967264 }
0x1308 PF: > { %s22_s19 = sadd.s32 1, %s3046_s19   ;;  %s3584_s17 = sld [smem:[#allocation7_spill]] }
0x1309   : > { %p19_p6 = scmp.ge.s32.totalorder %s22_s19, 4   ;;  %s3585_s18 = sld [smem:[#allocation8_spill]] }
0x130b   :  { %21 = sbr.rel (!%p19_p6) target bundleno = 2 (0x2), region = 118 }
0x1312   :  { %2420 = vsyncpa [#allocation5], 1 }
0x1313   :  { %2422 = vsyncpa [#allocation5 + $0x1], 1 }

</bundles_post_ra>
